<compile_context>
chip_gen: v7x
topology: tpu7x:2x2x1
jax: 0.10.0
libtpu: 0.0.40
codegen_flags: <defaults>
</compile_context>

<pallas_src>
import jax
import jax.numpy as jnp
from jax.experimental import pallas as pl
from jax.experimental.pallas import tpu as pltpu

IMG_DIM = 28 * 28 * 1  # 784
H1 = 256
H2 = 128
OUT = 1
NEG_SLOPE = 0.01


def _leaky_relu(x, negative_slope=NEG_SLOPE):
    return jnp.where(x >= 0, x, negative_slope * x)


def discriminator_kernel(x_ref, w1_ref, b1_ref, w2_ref, b2_ref, w3_ref, b3_ref,
                         o_ref):
    # x_ref: (TB, 784) bf16 batch tile.  w1/w2 bf16, biases f32, w3 f32 row.
    x = x_ref[...]  # bf16 straight into the MXU (no f32 upcast)

    h1 = jnp.dot(x, w1_ref[...], preferred_element_type=jnp.float32)
    h1 = _leaky_relu(h1 + b1_ref[...])                       # (TB, 256) f32

    h2 = jnp.dot(h1.astype(jnp.bfloat16), w2_ref[...],
                 preferred_element_type=jnp.float32)
    h2 = _leaky_relu(h2 + b2_ref[...])                       # (TB, 128) f32

    # Layer 3 (128 -> 1): VPU multiply + lane reduce instead of a degenerate
    # N=1 MXU matmul.
    logits = jnp.sum(h2 * w3_ref[...], axis=-1, keepdims=True) + b3_ref[...]

    o_ref[...] = jax.nn.sigmoid(logits).astype(o_ref.dtype)


def discriminator_forward(x, params, *, tb=1024):
    """x: (B, IMG_DIM) float32 -> (B, 1) float32 sigmoid probabilities."""
    w1, b1, w2, b2, w3, b3 = params
    B = x.shape[0]

    # Batch tile: multiple of 8 sublanes, capped at the (rounded-up) batch.
    tb = max(8, min(tb, ((B + 7) // 8) * 8))
    pad_b = pl.cdiv(B, tb) * tb
    if pad_b != B:
        x = jnp.pad(x, ((0, pad_b - B), (0, 0)))

    # bf16 matmul operands: halves weight HBM traffic and doubles MXU rate on
    # v6e/v7x.  Accumulation / bias / activation remain f32.
    x_bf = x.astype(jnp.bfloat16)
    w1_bf = w1.astype(jnp.bfloat16)
    w2_bf = w2.astype(jnp.bfloat16)
    w3_row = w3.reshape(1, H2).astype(jnp.float32)  # layer-3 weights for VPU path

    grid = (pad_b // tb,)

    # Weights/biases: same block index every grid step -> fetched once, stay
    # resident in VMEM.
    resident = lambda a: pl.BlockSpec(a.shape, lambda i: (0,) * a.ndim)

    out = pl.pallas_call(
        discriminator_kernel,
        out_shape=jax.ShapeDtypeStruct((pad_b, OUT), jnp.float32),
        grid=grid,
        in_specs=[
            pl.BlockSpec((tb, IMG_DIM), lambda i: (i, 0)),   # pipelined x tile
            resident(w1_bf), resident(b1),
            resident(w2_bf), resident(b2),
            resident(w3_row), resident(b3),
        ],
        # TODO(synk): (TB, 1) output lowers to masked partial stores; a
        # lane-dense transposed (1, B) output is a possible tiny further win.
        out_specs=pl.BlockSpec((tb, OUT), lambda i: (i, 0)),
        compiler_params=pltpu.CompilerParams(
            dimension_semantics=("parallel",),          # 2-TC sharding on v7x
            vmem_limit_bytes=64 * 1024 * 1024,          # explicit (v7x-safe)
        ),
    )(x_bf, w1_bf, b1, w2_bf, b2, w3_row, b3)

    return out[:B]


def init_params(key):
    """PyTorch nn.Linear-style init (uniform +/- 1/sqrt(fan_in)).

    Weights stored as (in_features, out_features); biases as (1, out_features).
    """
    ks = jax.random.split(key, 6)

    def linear(kw, kb, fan_in, fan_out):
        bound = 1.0 / jnp.sqrt(fan_in)
        w = jax.random.uniform(kw, (fan_in, fan_out), jnp.float32,
                               minval=-bound, maxval=bound)
        b = jax.random.uniform(kb, (1, fan_out), jnp.float32,
                               minval=-bound, maxval=bound)
        return w, b

    w1, b1 = linear(ks[0], ks[1], IMG_DIM, H1)
    w2, b2 = linear(ks[2], ks[3], H1, H2)
    w3, b3 = linear(ks[4], ks[5], H2, OUT)
    return (w1, b1, w2, b2, w3, b3)


def reference_forward(x, params):
    """Pure-JAX reference matching the kernel's precision policy
    (bf16 matmul operands, f32 accumulation / bias / activation)."""
    w1, b1, w2, b2, w3, b3 = params
    xb = x.astype(jnp.bfloat16)
    h1 = _leaky_relu(
        jnp.dot(xb, w1.astype(jnp.bfloat16),
                preferred_element_type=jnp.float32) + b1)
    h2 = _leaky_relu(
        jnp.dot(h1.astype(jnp.bfloat16), w2.astype(jnp.bfloat16),
                preferred_element_type=jnp.float32) + b2)
    logits = jnp.sum(h2 * w3.reshape(1, H2), axis=-1, keepdims=True) + b3
    return jax.nn.sigmoid(logits)


if __name__ == "__main__":
    key = jax.random.PRNGKey(0)
    k_params, k_x = jax.random.split(key)

    params = init_params(k_params)

    B = 256          # small test batch; flattened 28x28x1 image per row
    x = jax.random.normal(k_x, (B, IMG_DIM), dtype=jnp.float32)

    # tb=128 -> 2 grid steps, exercising the batch-grid pipelining path.
    out = discriminator_forward(x, params, tb=128)
    out = jax.block_until_ready(out)

    ref = reference_forward(x, params)
    assert out.shape == (B, OUT)
    assert jnp.allclose(out, ref, atol=2e-3, rtol=2e-3), (
        f"max abs err {jnp.max(jnp.abs(out - ref))}")

    print("KERNEL_OK")
</pallas_src>

<mosaic_0001>
module attributes {stable_mosaic.version = 11 : i64} {
  func.func @discriminator_kernel(%arg0: i32, %arg1: memref<128x784xbf16, #tpu.memory_space<vmem>>, %arg2: memref<784x256xbf16, #tpu.memory_space<vmem>>, %arg3: memref<1x256xf32, #tpu.memory_space<vmem>>, %arg4: memref<256x128xbf16, #tpu.memory_space<vmem>>, %arg5: memref<1x128xf32, #tpu.memory_space<vmem>>, %arg6: memref<1x128xf32, #tpu.memory_space<vmem>>, %arg7: memref<1x1xf32, #tpu.memory_space<vmem>>, %arg8: memref<128x1xf32, #tpu.memory_space<vmem>>) attributes {dimension_semantics = [#tpu.dimension_semantics<parallel>], iteration_bounds = array<i64: 2>, scalar_prefetch = 0 : i64, scratch_operands = 0 : i64, tpu.core_type = #tpu.core_type<tc>, window_params = [{transform_indices = @transform_0, window_bounds = array<i64: 128, 784>}, {pipeline_mode = #tpu.pipeline_mode<synchronous>, transform_indices = @transform_1, window_bounds = array<i64: 784, 256>}, {pipeline_mode = #tpu.pipeline_mode<synchronous>, transform_indices = @transform_2, window_bounds = array<i64: 1, 256>}, {pipeline_mode = #tpu.pipeline_mode<synchronous>, transform_indices = @transform_3, window_bounds = array<i64: 256, 128>}, {pipeline_mode = #tpu.pipeline_mode<synchronous>, transform_indices = @transform_4, window_bounds = array<i64: 1, 128>}, {pipeline_mode = #tpu.pipeline_mode<synchronous>, transform_indices = @transform_5, window_bounds = array<i64: 1, 128>}, {pipeline_mode = #tpu.pipeline_mode<synchronous>, transform_indices = @transform_6, window_bounds = array<i64: 1, 1>}, {transform_indices = @transform_7, window_bounds = array<i64: 128, 1>}]} {
    %c0 = arith.constant 0 : index
    %c0_0 = arith.constant 0 : index
    %0 = vector.load %arg1[%c0, %c0_0] : memref<128x784xbf16, #tpu.memory_space<vmem>>, vector<128x784xbf16>
    %c0_1 = arith.constant 0 : index
    %c0_2 = arith.constant 0 : index
    %1 = vector.load %arg2[%c0_1, %c0_2] : memref<784x256xbf16, #tpu.memory_space<vmem>>, vector<784x256xbf16>
    %cst = arith.constant dense<0.000000e+00> : vector<128x256xf32>
    %2 = tpu.matmul %0, %1, %cst {dimension_numbers = #tpu.dot_dimension_numbers<[1], [0], [0], [1], [0, 0, 1, 1], [], []>} : vector<128x784xbf16>, vector<784x256xbf16>, vector<128x256xf32> -> vector<128x256xf32>
    %c0_3 = arith.constant 0 : index
    %c0_4 = arith.constant 0 : index
    %3 = vector.load %arg3[%c0_3, %c0_4] : memref<1x256xf32, #tpu.memory_space<vmem>>, vector<1x256xf32>
    %4 = vector.broadcast %3 : vector<1x256xf32> to vector<128x256xf32>
    %5 = arith.addf %2, %4 : vector<128x256xf32>
    %cst_5 = arith.constant 0.000000e+00 : f32
    %6 = vector.broadcast %cst_5 : f32 to vector<128x256xf32>
    %7 = arith.cmpf oge, %5, %6 : vector<128x256xf32>
    %cst_6 = arith.constant 0.00999999977 : f32
    %8 = vector.broadcast %cst_6 : f32 to vector<128x256xf32>
    %9 = arith.mulf %8, %5 : vector<128x256xf32>
    %10 = arith.select %7, %5, %9 : vector<128x256xi1>, vector<128x256xf32>
    %11 = arith.truncf %10 : vector<128x256xf32> to vector<128x256xbf16>
    %c0_7 = arith.constant 0 : index
    %c0_8 = arith.constant 0 : index
    %12 = vector.load %arg4[%c0_7, %c0_8] : memref<256x128xbf16, #tpu.memory_space<vmem>>, vector<256x128xbf16>
    %cst_9 = arith.constant dense<0.000000e+00> : vector<128x128xf32>
    %13 = tpu.matmul %11, %12, %cst_9 {dimension_numbers = #tpu.dot_dimension_numbers<[1], [0], [0], [1], [0, 0, 1, 1], [], []>} : vector<128x256xbf16>, vector<256x128xbf16>, vector<128x128xf32> -> vector<128x128xf32>
    %c0_10 = arith.constant 0 : index
    %c0_11 = arith.constant 0 : index
    %14 = vector.load %arg5[%c0_10, %c0_11] : memref<1x128xf32, #tpu.memory_space<vmem>>, vector<1x128xf32>
    %15 = vector.broadcast %14 : vector<1x128xf32> to vector<128x128xf32>
    %16 = arith.addf %13, %15 : vector<128x128xf32>
    %cst_12 = arith.constant 0.000000e+00 : f32
    %17 = vector.broadcast %cst_12 : f32 to vector<128x128xf32>
    %18 = arith.cmpf oge, %16, %17 : vector<128x128xf32>
    %cst_13 = arith.constant 0.00999999977 : f32
    %19 = vector.broadcast %cst_13 : f32 to vector<128x128xf32>
    %20 = arith.mulf %19, %16 : vector<128x128xf32>
    %21 = arith.select %18, %16, %20 : vector<128x128xi1>, vector<128x128xf32>
    %c0_14 = arith.constant 0 : index
    %c0_15 = arith.constant 0 : index
    %22 = vector.load %arg6[%c0_14, %c0_15] : memref<1x128xf32, #tpu.memory_space<vmem>>, vector<1x128xf32>
    %23 = vector.broadcast %22 : vector<1x128xf32> to vector<128x128xf32>
    %24 = arith.mulf %21, %23 : vector<128x128xf32>
    %cst_16 = arith.constant dense<0.000000e+00> : vector<128xf32>
    %25 = vector.multi_reduction <add>, %24, %cst_16 [1] : vector<128x128xf32> to vector<128xf32>
    %26 = vector.shape_cast %25 : vector<128xf32> to vector<128x1xf32>
    %c0_17 = arith.constant 0 : index
    %c0_18 = arith.constant 0 : index
    %27 = vector.load %arg7[%c0_17, %c0_18] : memref<1x1xf32, #tpu.memory_space<vmem>>, vector<1x1xf32>
    %28 = vector.broadcast %27 : vector<1x1xf32> to vector<128x1xf32>
    %29 = arith.addf %26, %28 : vector<128x1xf32>
    %30 = arith.negf %29 : vector<128x1xf32>
    %31 = math.exp %30 : vector<128x1xf32>
    %cst_19 = arith.constant 1.000000e+00 : f32
    %32 = vector.broadcast %cst_19 : f32 to vector<128x1xf32>
    %33 = arith.addf %32, %31 : vector<128x1xf32>
    %34 = arith.divf %32, %33 : vector<128x1xf32>
    %c0_20 = arith.constant 0 : index
    %c0_21 = arith.constant 0 : index
    %35 = vector.load %arg8[%c0_20, %c0_21] : memref<128x1xf32, #tpu.memory_space<vmem>>, vector<128x1xf32>
    tpu.vector_store %arg8[%c0_20, %c0_21], %34 {strides = array<i32>} : memref<128x1xf32, #tpu.memory_space<vmem>>, vector<128x1xf32>,
    return
  }
  func.func @transform_0(%arg0: i32) -> (i32, i32) {
    %c0_i32 = arith.constant 0 : i32
    %c0_i32_0 = arith.constant 0 : i32
    return %arg0, %c0_i32 : i32, i32
  }
  func.func @transform_1(%arg0: i32) -> (i32, i32) {
    %c0_i32 = arith.constant 0 : i32
    %c0_i32_0 = arith.constant 0 : i32
    %c0_i32_1 = arith.constant 0 : i32
    return %c0_i32, %c0_i32_0 : i32, i32
  }
  func.func @transform_2(%arg0: i32) -> (i32, i32) {
    %c0_i32 = arith.constant 0 : i32
    %c0_i32_0 = arith.constant 0 : i32
    %c0_i32_1 = arith.constant 0 : i32
    return %c0_i32, %c0_i32_0 : i32, i32
  }
  func.func @transform_3(%arg0: i32) -> (i32, i32) {
    %c0_i32 = arith.constant 0 : i32
    %c0_i32_0 = arith.constant 0 : i32
    %c0_i32_1 = arith.constant 0 : i32
    return %c0_i32, %c0_i32_0 : i32, i32
  }
  func.func @transform_4(%arg0: i32) -> (i32, i32) {
    %c0_i32 = arith.constant 0 : i32
    %c0_i32_0 = arith.constant 0 : i32
    %c0_i32_1 = arith.constant 0 : i32
    return %c0_i32, %c0_i32_0 : i32, i32
  }
  func.func @transform_5(%arg0: i32) -> (i32, i32) {
    %c0_i32 = arith.constant 0 : i32
    %c0_i32_0 = arith.constant 0 : i32
    %c0_i32_1 = arith.constant 0 : i32
    return %c0_i32, %c0_i32_0 : i32, i32
  }
  func.func @transform_6(%arg0: i32) -> (i32, i32) {
    %c0_i32 = arith.constant 0 : i32
    %c0_i32_0 = arith.constant 0 : i32
    %c0_i32_1 = arith.constant 0 : i32
    return %c0_i32, %c0_i32_0 : i32, i32
  }
  func.func @transform_7(%arg0: i32) -> (i32, i32) {
    %c0_i32 = arith.constant 0 : i32
    %c0_i32_0 = arith.constant 0 : i32
    return %arg0, %c0_i32 : i32, i32
  }
}

</mosaic_0001>

<bundles_post_ra>
// kernel: tpu_custom_call.1
= control target key start
LH: loop header
LB: loop body
LE: loop exit
PB: predicated region body
PF: predicated region fallthrough
CT: control target
= control target key end

     0   :  { %s4264_s0 = inlined_call_operand.hbm [shape: bf16[256,784], index: 0, kind: input, shape index: {}]   ;;  %s4265_s1 = inlined_call_operand.hbm [shape: bf16[784,256], index: 1, kind: input, shape index: {}]   ;;  %s4266_s2 = inlined_call_operand.hbm [shape: f32[1,256], index: 2, kind: input, shape index: {}]   ;;  %s4267_s3 = inlined_call_operand.hbm [shape: bf16[256,128], index: 3, kind: input, shape index: {}]   ;;  %s4268_s4 = inlined_call_operand.hbm [shape: f32[1,128], index: 4, kind: input, shape index: {}]   ;;  %s4269_s5 = inlined_call_operand.hbm [shape: f32[1,128], index: 5, kind: input, shape index: {}]   ;;  %s4270_s6 = inlined_call_operand.<no memory space> [shape: f32[1,1], index: 6, kind: input, shape index: {}]   ;;  %s4271_s7 = inlined_call_operand.hbm [shape: f32[256,1], index: 7, kind: output, shape index: {}]  }
   0x1   :  { %v12_v0 = vstv %s4270_s6 }
   0x2   :  { %13 = vst [vmem:[#allocation2] sm:$0x1] %v12_v0 }
   0x3   :  { %14 = vsyncpa [#allocation4], 0 }
   0x4   :  { %16 = vsyncpa [#allocation4 + $0x1], 0 }
   0x5   :  { %17 = vsyncpa [#allocation7], 0 }
   0x6   :  { %18 = vsyncpa [#allocation10], 0 }
   0x7   :  { %19 = vsyncpa [#allocation13], 0 }
   0x8   :  { %20 = vsyncpa [#allocation5], 0 }
   0x9   :  { %22 = vsyncpa [#allocation5 + $0x1], 0  ;;  %s3679_s26 = smov 0   ;;  %s3681_s27 = smov 0  }
   0xa   :  { %s3683_s28 = smov 0   ;;  %s3685_s29 = smov 0  }
   0xb LB: > { %s3620_s6 = smov [#allocation6]   ;;  %s3700_s8 = sadd.s32 4294967295, %s3618_s29   ;;  %s3618_s29 = sphi %s3685_s29, %s4296_s29   ;;  %s3614_s28 = sphi %s3683_s28, %s4295_s28   ;;  %s3610_s27 = sphi %s3681_s27, %s4294_s27   ;;  %s3606_s26 = sphi %s3679_s26, %s4293_s26  }
   0xc   : > { %s223_s30 = sshll.u32 %s3620_s6, 4  ;;  %p2510_p0 = scmp.ge.s32.totalorder %s3618_s29, 1  ;;  %s3705_s30 = int_to_ptr.vmem [resolvable:$true] %s223_s30 }
   0xd   : > { %p4272_p1 = scmp.eq.s32.totalorder %s3700_s8, 0  ;;  %p211_p2 = scmp.lt.s32.totalorder %s3618_s29, 3 }
   0xe   : > { %s3621_s10 = smov [#allocation9]   ;;  %s3622_s13 = smov [#allocation8]  }
   0xf   : > { %p3707_p3 = pnand %p2510_p0, %p211_p2  ;;  %s247_s11 = sshll.u32 %s3621_s10, 4  ;;  %s3720_s11 = int_to_ptr.vmem [resolvable:$true] %s247_s11 }
  0x10   : > { %s3722_s14 = sshll.u32 %s3622_s13, 4  ;;  %s3370_s17 = scalar_lea.hbm %s4265_s1, 12544  ;;  %s238_s14 = int_to_ptr.vmem [resolvable:$true] %s3722_s14 }
  0x11   : > { %s4275_s9 = scalar_select %p3707_p3, 1, 0 }
  0x12   : > { %p2981_p5 = pneg %p3707_p3  ;;  %p3371_p7 = scmp.ne.s32.totalorder %s4265_s1, %s3370_s17 }
  0x13   : > { %p3377_p11 = scmp.lt.u32.totalorder %s3370_s17, %s4265_s1 }
  0x14   : > { %p3716_p6 = pnand %p2981_p5, %p4272_p1 }
  0x16   : > { %p3732_p8 = pneg %p3716_p6 }
  0x18   : > { %p3373_p9 = pnand %p3732_p8, %p3371_p7 }
  0x1a   : > { %p3374_p10 = pneg %p3373_p9 }
  0x1c   : > { %p3379_p12 = pnand %p3377_p11, %p3374_p10 }
  0x1e   : > { %3382 = shalt.err (!%p3379_p12)
}
  0x1f   : > { %s3383_s23 = scalar_lea.vmem %s3705_s30, 12544  ;;  %p3391_p5 = scmp.lt.s32.totalorder %s3705_s30, %s3705_s30 }
  0x20   : > { %p3384_p13 = scmp.ne.s32.totalorder %s3705_s30, %s3383_s23  ;;  %p3392_p4 = scmp.lt.s32.totalorder %s3383_s23, %s3383_s23 }
  0x22   : > { %p3386_p0 = pnand %p3384_p13, %p3732_p8  ;;  %p3393_p7 = por %p3392_p4, %p3391_p5 }
  0x24   : > { %p3387_p2 = pneg %p3386_p0 }
  0x26   : > { %p3394_p9 = pnand %p3393_p7, %p3387_p2 }
  0x28   : > { %3397 = shalt.err (!%p3394_p9)
}
  0x29   : > { %s3623_s24 = smov 128   ;;  %s3624_s25 = smov 8  }
  0x2a   : > { %2984 = dma.hbm_to_vmem [thread:$0]  (!%p3716_p6), %s4265_s1, 12544, %s3705_s30, [#allocation7], %s3623_s24, %s3623_s24, %s3624_s25  }
  0x2b   : > { %s3398_s16 = scalar_lea.hbm %s4267_s3, 2048 }
  0x2c   : > { %p3399_p4 = scmp.ne.s32.totalorder %s4267_s3, %s3398_s16  ;;  %p3405_p12 = scmp.lt.u32.totalorder %s3398_s16, %s4267_s3 }
  0x2e   : > { %p3401_p10 = pnand %p3399_p4, %p3732_p8 }
  0x30   : > { %p3402_p11 = pneg %p3401_p10 }
  0x32   : > { %p3407_p13 = pnand %p3405_p12, %p3402_p11 }
  0x34   : > { %3410 = shalt.err (!%p3407_p13)
}
  0x35   : > { %s3411_s30 = scalar_lea.vmem %s3720_s11, 2048  ;;  %p3419_p7 = scmp.lt.s32.totalorder %s3720_s11, %s3720_s11 }
  0x36   : > { %p3412_p0 = scmp.ne.s32.totalorder %s3720_s11, %s3411_s30  ;;  %p3420_p9 = scmp.lt.s32.totalorder %s3411_s30, %s3411_s30 }
  0x38   : > { %p3414_p2 = pnand %p3412_p0, %p3732_p8  ;;  %p3421_p4 = por %p3420_p9, %p3419_p7 }
  0x3a   : > { %p3415_p5 = pneg %p3414_p2 }
  0x3c   : > { %p3422_p10 = pnand %p3421_p4, %p3415_p5 }
  0x3e   : > { %3425 = shalt.err (!%p3422_p10)
}
  0x3f   : > { %s3625_s22 = smov 64   ;;  %s3626_s23 = smov 4  }
  0x40   : > { %2990 = dma.hbm_to_vmem [thread:$0]  (!%p3716_p6), %s4267_s3, 2048, %s3720_s11, [#allocation10], %s3625_s22, %s3625_s22, %s3626_s23  }
  0x41   : > { %s3426_s13 = scalar_lea.hbm %s4266_s2, 32 }
  0x42   : > { %p3427_p11 = scmp.ne.s32.totalorder %s4266_s2, %s3426_s13  ;;  %p3433_p0 = scmp.lt.u32.totalorder %s3426_s13, %s4266_s2 }
  0x44   : > { %p3429_p12 = pnand %p3427_p11, %p3732_p8 }
  0x46   : > { %p3430_p13 = pneg %p3429_p12 }
  0x48   : > { %p3435_p2 = pnand %p3433_p0, %p3430_p13 }
  0x4a   : > { %3438 = shalt.err (!%p3435_p2)
}
  0x4b   : > { %s3439_s19 = scalar_lea.vmem %s238_s14, 32  ;;  %p3447_p4 = scmp.lt.s32.totalorder %s238_s14, %s238_s14 }
  0x4c   : > { %p3440_p5 = scmp.ne.s32.totalorder %s238_s14, %s3439_s19  ;;  %p3448_p10 = scmp.lt.s32.totalorder %s3439_s19, %s3439_s19 }
  0x4e   : > { %p3442_p7 = pnand %p3440_p5, %p3732_p8  ;;  %p3449_p1 = por %p3448_p10, %p3447_p4 }
  0x50   : > { %p3443_p9 = pneg %p3442_p7 }
  0x52   : > { %p3450_p3 = pnand %p3449_p1, %p3443_p9 }
  0x54   : > { %3453 = shalt.err (!%p3450_p3)
}
  0x55   : > { %2987 = dma.hbm_to_vmem [thread:$0]  (!%p3716_p6), %s4266_s2, 32, %s238_s14, [#allocation7]  }
  0x56   : > { %s3627_s30 = smov [#allocation11]   ;;  %s3628_s23 = smov [#allocation12]  }
  0x57   : > { %s261_s22 = sshll.u32 %s3627_s30, 4  ;;  %s272_s24 = sshll.u32 %s3628_s23, 4  ;;  %s262_s22 = int_to_ptr.vmem [resolvable:$true] %s261_s22  ;;  %s273_s24 = int_to_ptr.vmem [resolvable:$true] %s272_s24 }
  0x58   : > { %s3454_s10 = scalar_lea.hbm %s4268_s4, 16 }
  0x59   : > { %p3455_p1 = scmp.ne.s32.totalorder %s4268_s4, %s3454_s10  ;;  %p3461_p12 = scmp.lt.u32.totalorder %s3454_s10, %s4268_s4 }
  0x5b   : > { %p3457_p3 = pnand %p3455_p1, %p3732_p8 }
  0x5d   : > { %p3458_p11 = pneg %p3457_p3 }
  0x5f   : > { %p3463_p13 = pnand %p3461_p12, %p3458_p11 }
  0x61   : > { %3466 = shalt.err (!%p3463_p13)
}
  0x62   : > { %s3467_s14 = scalar_lea.vmem %s262_s22, 16  ;;  %s3474_s18 = scalar_lea.vmem %s262_s22, 32 }
  0x63   : > { %p3468_p0 = scmp.ne.s32.totalorder %s262_s22, %s3467_s14  ;;  %p3475_p7 = scmp.lt.s32.totalorder %s262_s22, %s262_s22 }
  0x64   : > { %p3476_p9 = scmp.lt.s32.totalorder %s3474_s18, %s3467_s14 }
  0x65   : > { %p3470_p2 = pnand %p3468_p0, %p3732_p8 }
  0x66   : > { %p3477_p4 = por %p3476_p9, %p3475_p7 }
  0x67   : > { %p3471_p5 = pneg %p3470_p2 }
  0x69   : > { %p3478_p10 = pnand %p3477_p4, %p3471_p5 }
  0x6b   : > { %3481 = shalt.err (!%p3478_p10)
}
  0x6c   : > { %2993 = dma.hbm_to_vmem [thread:$0]  (!%p3716_p6), %s4268_s4, 16, %s262_s22, [#allocation10]  }
  0x6d   : > { %s3482_s23 = scalar_lea.hbm %s4269_s5, 16 }
  0x6e   : > { %p3483_p1 = scmp.ne.s32.totalorder %s4269_s5, %s3482_s23  ;;  %p3489_p12 = scmp.lt.u32.totalorder %s3482_s23, %s4269_s5 }
  0x70   : > { %p3485_p3 = pnand %p3483_p1, %p3732_p8 }
  0x72   : > { %p3486_p11 = pneg %p3485_p3 }
  0x74   : > { %p3491_p13 = pnand %p3489_p12, %p3486_p11 }
  0x76   : > { %3494 = shalt.err (!%p3491_p13)
}
  0x77   : > { %s3495_s15 = scalar_lea.vmem %s273_s24, 16  ;;  %s3502_s22 = scalar_lea.vmem %s273_s24, 32 }
  0x78   : > { %p3496_p0 = scmp.ne.s32.totalorder %s273_s24, %s3495_s15  ;;  %p3503_p7 = scmp.lt.s32.totalorder %s273_s24, %s273_s24 }
  0x79   : > { %p3504_p9 = scmp.lt.s32.totalorder %s3502_s22, %s3495_s15 }
  0x7a   : > { %p3498_p2 = pnand %p3496_p0, %p3732_p8 }
  0x7b   : > { %p3505_p4 = por %p3504_p9, %p3503_p7 }
  0x7c   : > { %p3499_p5 = pneg %p3498_p2 }
  0x7e   : > { %p3506_p10 = pnand %p3505_p4, %p3499_p5 }
  0x80   : > { %3509 = shalt.err (!%p3506_p10)
}
  0x81   : > { %2996 = dma.hbm_to_vmem [thread:$0]  (!%p3716_p6), %s4269_s5, 16, %s273_s24, [#allocation13]  }
  0x82   : > { %s2509_s20 = sadd.s32 4294967294, %s3618_s29   ;;  %s3833_s12 = sadd.s32 1, %s3618_s29  }
  0x83   : > { %s35_s14 = sadd.s32 1, %s3614_s28  ;;  %s32_s18 = ssub.s32 %s3618_s29, %s3833_s12 }
  0x84   : > { %p42_p8 = scmp.ne.s32.totalorder %s3614_s28, %s3610_s27  ;;  %p33_p1 = scmp.eq.s32.totalorder %s32_s18, 0 }
  0x85   : > { %p43_p3 = scmp.eq.s32.totalorder %s3618_s29, 0  ;;  %p48_p11 = scmp.ne.s32.totalorder %s3610_s27, %s3606_s26 }
  0x86   : > { %p198_p12 = scmp.eq.s32.totalorder %s3700_s8, 1  ;;  %p4278_p0 = scmp.eq.s32.totalorder %s3700_s8, 0 }
  0x87   : > { %s3845_s19 = scalar_select %p33_p1, %s3614_s28, %s35_s14  }
  0x88   : > { %p44_p13 = por %p43_p3, %p42_p8  ;;  %p3849_p2 = por %p4278_p0, %p48_p11 }
  0x89   : > { %p3853_p6 = por %p198_p12, %p42_p8  ;;  %p204_p5 = scmp.eq.s32.totalorder %s2509_s20, 1 }
  0x8a   : > { %p3010_p7 = scmp.lt.s32.totalorder %s3618_s29, 2  ;;  %s286_s21 = sand.u32 1, %s3614_s28  }
  0x8b   : > { %s4280_s24 = scalar_select %p3853_p6, 1, 0 }
  0x8c   : > { %p3859_p9 = por %p204_p5, %p48_p11  ;;  %s2954_s23 = smul.u32 448, %s286_s21 }
  0x8d   : > { %p3863_p4 = pnand %p3010_p7, %p44_p13  ;;  %s2955_s6 = smul.u32 7168, %s3618_s29 }
  0x8e   : > { %s4281_s30 = scalar_select %p3859_p9, 1, 0 }
  0x8f   : > { %s3871_s15 = scalar_lea.hbm %s4264_s0, %s2955_s6  ;;  %s290_s22 = scalar_lea.vmem [#allocation3], %s2954_s23 }
  0x90   : > { %s298_s16 = sshll.u32 %s290_s22, 4  ;;  %s3875_s17 = scalar_lea.sflag [#allocation4], %s286_s21  ;;  %s3873_s16 = int_to_ptr.vmem [resolvable:$true] %s298_s16 }
  0x91   : > { %s3510_s20 = scalar_lea.hbm %s3871_s15, 7168  ;;  %p3512_p8 = pneg %p3863_p4 }
  0x92   : > { %p3511_p10 = scmp.ne.s32.totalorder %s3871_s15, %s3510_s20  ;;  %s3515_s6 = scalar_lea.hbm %s4264_s0, 14336 }
  0x93   : > { %p3516_p11 = scmp.lt.u32.totalorder %s3871_s15, %s4264_s0  ;;  %p3517_p12 = scmp.lt.u32.totalorder %s3515_s6, %s3510_s20 }
  0x94   : > { %p3513_p1 = pnand %p3512_p8, %p3511_p10  ;;  %p3519_p0 = scmp.lt.u32.totalorder %s3510_s20, %s3871_s15 }
  0x95   : > { %p3518_p13 = por %p3517_p12, %p3516_p11 }
  0x96   : > { %p3514_p3 = pneg %p3513_p1 }
  0x97   : > { %p3520_p5 = por %p3519_p0, %p3518_p13 }
  0x99   : > { %p3521_p7 = pnand %p3520_p5, %p3514_p3 }
  0x9b   : > { %3524 = shalt.err (!%p3521_p7)
}
  0x9c   : > { %s3525_s21 = scalar_lea.vmem %s3873_s16, 7168  ;;  %s3629_s23 = smov [#allocation3]  }
  0x9d   : > { %p3526_p10 = scmp.ne.s32.totalorder %s3873_s16, %s3525_s21  ;;  %s3530_s22 = sshll.u32 %s3629_s23, 4  ;;  %s3531_s22 = int_to_ptr.vmem [resolvable:$false] %s3530_s22 }
  0x9e   : > { %s3532_s14 = scalar_lea.vmem %s3531_s22, 14336  ;;  %p3533_p6 = scmp.lt.s32.totalorder %s3873_s16, %s3531_s22 }
  0x9f   : > { %p3528_p1 = pnand %p3526_p10, %p3512_p8  ;;  %p3534_p11 = scmp.lt.s32.totalorder %s3532_s14, %s3525_s21 }
  0xa1   : > { %p3529_p9 = pneg %p3528_p1  ;;  %p3535_p12 = por %p3534_p11, %p3533_p6 }
  0xa3   : > { %p3536_p13 = pnand %p3535_p12, %p3529_p9 }
  0xa5   : > { %3539 = shalt.err (!%p3536_p13)
}
  0xa6   : > { %s3630_s20 = smov 448   ;;  %s3631_s18 = smov 28  }
  0xa7   : > { %3000 = dma.hbm_to_vmem [thread:$0]  (!%p3863_p4), %s3871_s15, 7168, %s3873_s16, %s3875_s17, %s3630_s20, %s3630_s20, %s3631_s18  }
  0xa8   : > { %p4283_p8 = scmp.ne.s32.totalorder %s4275_s9, 0 }
  0xa9   : > { %s3906_s6 = sand.u32 (!%p4283_p8), 1, %s3610_s27  }
  0xaa   : > { %310 = sbr.rel (%p4283_p8) target bundleno = 1038 (0x40e), region = 48  ;;  %s313_s13 = scalar_lea.sflag (!%p4283_p8), [#allocation4], %s3906_s6 }
  0xab   : > { %s2956_s10 = smul.u32 (!%p4283_p8), 448, %s3906_s6 }
  0xad   : > { %s3910_s21 = scalar_lea.vmem (!%p4283_p8), [#allocation3], %s2956_s10 }
  0xb1   : > { %3585 = dma.done.wait (%p3849_p2), %s313_s13, 7168  }
  0xb2   : > { %3587 = vsyncadd (%p3849_p2), %s313_s13, 4294960128  ;;  %p4284_p6 = scmp.eq.s32.totalorder %s3700_s8, 0 }
  0xb4   : > { %3589 = dma.done.wait (%p4284_p6), [#allocation7], 12576   ;;  %p4285_p9 = pmov %p4284_p6 }
  0xb5   : > { %p4286_p4 = pmov %p4284_p6 }
  0xb6   : > { %3591 = vsyncadd (%p4285_p9), [#allocation7], 4294954720 }
  0xb7   : > { %3593 = dma.done.wait (%p4286_p4), [#allocation10], 2064   ;;  %p4287_p3 = pmov %p4286_p4 }
  0xb9   : > { %3595 = vsyncadd (%p4287_p3), [#allocation10], 4294965232  ;;  %p4288_p0 = pmov %p4287_p3 }
  0xbb   : > { %3597 = dma.done.wait (%p4288_p0), [#allocation13], 16   ;;  %p4289_p5 = pmov %p4288_p0 }
  0xbc   : > { %v3063_v1 = vld [vmem:[#allocation6 + $0x4] ss:$8 sps:$4 sm:$0xff]   ;;  %v3067_v3 = vld [vmem:[#allocation6] ss:$8 sps:$4 sm:$0xff]   ;;  %v3069_v5 = vld [vmem:[#allocation6 + $0x14] ss:$8 sps:$4 sm:$0xff]  }
  0xbd   : > { %3599 = vsyncadd (%p4289_p5), [#allocation13], 4294967280  ;;  %v3065_v2 = vld [vmem:[#allocation6 + $0x104] ss:$8 sps:$4 sm:$0xff]   ;;  %1339 = vmatprep.subr.bf16.mxu1 %v3063_v1  ;;  %v3068_v4 = vld [vmem:[#allocation6 + $0x100] ss:$8 sps:$4 sm:$0xff]  }
  0xbe   : > { %1452 = vmatprep.subr.bf16.mxu0 %v3065_v2  ;;  %1340 = vmatpush1.bf16.msra.mxu1 %v3067_v3  ;;  %v3071_v6 = vld [vmem:[#allocation6 + $0x114] ss:$8 sps:$4 sm:$0xff]   ;;  %v3073_v7 = vld [vmem:[#allocation6 + $0x10] ss:$8 sps:$4 sm:$0xff]   ;;  %v3075_v9 = vld [vmem:[#allocation6 + $0x24] ss:$8 sps:$4 sm:$0xff]  }
  0xbf   : > { %1453 = vmatpush1.bf16.msra.mxu0 %v3068_v4  ;;  %1341 = vmatprep.subr.bf16.mxu1 %v3069_v5  ;;  %v3074_v8 = vld [vmem:[#allocation6 + $0x110] ss:$8 sps:$4 sm:$0xff]   ;;  %v3077_v10 = vld [vmem:[#allocation6 + $0x124] ss:$8 sps:$4 sm:$0xff]   ;;  %v3079_v11 = vld [vmem:[#allocation6 + $0x20] ss:$8 sps:$4 sm:$0xff]  }
  0xc0   : > { %1454 = vmatprep.subr.bf16.mxu0 %v3071_v6  ;;  %v3080_v12 = vld [vmem:[#allocation6 + $0x120] ss:$8 sps:$4 sm:$0xff]   ;;  %v3081_v13 = vld [vmem:[#allocation6 + $0x34] ss:$8 sps:$4 sm:$0xff]   ;;  %v3085_v15 = vld [vmem:[#allocation6 + $0x30] ss:$8 sps:$4 sm:$0xff]  }
  0xc1   : > { %v3083_v14 = vld [vmem:[#allocation6 + $0x134] ss:$8 sps:$4 sm:$0xff]   ;;  %v3086_v16 = vld [vmem:[#allocation6 + $0x130] ss:$8 sps:$4 sm:$0xff]   ;;  %v3087_v17 = vld [vmem:[#allocation6 + $0x44] ss:$8 sps:$4 sm:$0xff]  }
  0xc2   : > { %1342 = vmatpush1.bf16.msra.mxu1 %v3073_v7  ;;  %v3089_v18 = vld [vmem:[#allocation6 + $0x144] ss:$8 sps:$4 sm:$0xff]   ;;  %v3091_v19 = vld [vmem:[#allocation6 + $0x40] ss:$8 sps:$4 sm:$0xff]   ;;  %v3093_v21 = vld [vmem:[#allocation6 + $0x54] ss:$8 sps:$4 sm:$0xff]  }
  0xc3   : > { %1455 = vmatpush1.bf16.msra.mxu0 %v3074_v8  ;;  %1343 = vmatprep.subr.bf16.mxu1 %v3075_v9  ;;  %v3092_v20 = vld [vmem:[#allocation6 + $0x140] ss:$8 sps:$4 sm:$0xff]   ;;  %v3095_v22 = vld [vmem:[#allocation6 + $0x154] ss:$8 sps:$4 sm:$0xff]   ;;  %v3097_v23 = vld [vmem:[#allocation6 + $0x50] ss:$8 sps:$4 sm:$0xff]  }
  0xc4   : > { %1456 = vmatprep.subr.bf16.mxu0 %v3077_v10  ;;  %v3098_v24 = vld [vmem:[#allocation6 + $0x150] ss:$8 sps:$4 sm:$0xff]   ;;  %v3099_v25 = vld [vmem:[#allocation6 + $0x64] ss:$8 sps:$4 sm:$0xff]   ;;  %v3103_v27 = vld [vmem:[#allocation6 + $0x60] ss:$8 sps:$4 sm:$0xff]  }
  0xc5   : > { %v3101_v26 = vld [vmem:[#allocation6 + $0x164] ss:$8 sps:$4 sm:$0xff]   ;;  %v3104_v28 = vld [vmem:[#allocation6 + $0x160] ss:$8 sps:$4 sm:$0xff]   ;;  %v3105_v29 = vld [vmem:[#allocation6 + $0x74] ss:$8 sps:$4 sm:$0xff]  }
  0xc6   : > { %1344 = vmatpush1.bf16.msra.mxu1 %v3079_v11  ;;  %v3107_v30 = vld [vmem:[#allocation6 + $0x174] ss:$8 sps:$4 sm:$0xff]   ;;  %v3109_v31 = vld [vmem:[#allocation6 + $0x70] ss:$8 sps:$4 sm:$0xff]   ;;  %v3111_v33 = vld [vmem:[#allocation6 + $0x84] ss:$8 sps:$4 sm:$0xff]  }
  0xc7   : > { %1457 = vmatpush1.bf16.msra.mxu0 %v3080_v12  ;;  %1345 = vmatprep.subr.bf16.mxu1 %v3081_v13  ;;  %v3110_v32 = vld [vmem:[#allocation6 + $0x170] ss:$8 sps:$4 sm:$0xff]   ;;  %v3113_v34 = vld [vmem:[#allocation6 + $0x184] ss:$8 sps:$4 sm:$0xff]   ;;  %v3115_v35 = vld [vmem:[#allocation6 + $0x80] ss:$8 sps:$4 sm:$0xff]  }
  0xc8   : > { %1458 = vmatprep.subr.bf16.mxu0 %v3083_v14  ;;  %v3116_v36 = vld [vmem:[#allocation6 + $0x180] ss:$8 sps:$4 sm:$0xff]   ;;  %v3117_v37 = vld [vmem:[#allocation6 + $0x94] ss:$8 sps:$4 sm:$0xff]   ;;  %v3121_v39 = vld [vmem:[#allocation6 + $0x90] ss:$8 sps:$4 sm:$0xff]  }
  0xc9   : > { %v3119_v38 = vld [vmem:[#allocation6 + $0x194] ss:$8 sps:$4 sm:$0xff]   ;;  %v3122_v40 = vld [vmem:[#allocation6 + $0x190] ss:$8 sps:$4 sm:$0xff]   ;;  %v3123_v41 = vld [vmem:[#allocation6 + $0xa4] ss:$8 sps:$4 sm:$0xff]  }
  0xca   : > { %1346 = vmatpush1.bf16.msra.mxu1 %v3085_v15  ;;  %v3125_v42 = vld [vmem:[#allocation6 + $0x1a4] ss:$8 sps:$4 sm:$0xff]   ;;  %v3127_v43 = vld [vmem:[#allocation6 + $0xa0] ss:$8 sps:$4 sm:$0xff]   ;;  %v3129_v45 = vld [vmem:[#allocation6 + $0xb4] ss:$8 sps:$4 sm:$0xff]  }
  0xcb   : > { %1459 = vmatpush1.bf16.msra.mxu0 %v3086_v16  ;;  %1347 = vmatprep.subr.bf16.mxu1 %v3087_v17  ;;  %v3128_v44 = vld [vmem:[#allocation6 + $0x1a0] ss:$8 sps:$4 sm:$0xff]   ;;  %v3131_v46 = vld [vmem:[#allocation6 + $0x1b4] ss:$8 sps:$4 sm:$0xff]   ;;  %v3133_v47 = vld [vmem:[#allocation6 + $0xb0] ss:$8 sps:$4 sm:$0xff]  }
  0xcc   : > { %1460 = vmatprep.subr.bf16.mxu0 %v3089_v18  ;;  %v3134_v48 = vld [vmem:[#allocation6 + $0x1b0] ss:$8 sps:$4 sm:$0xff]   ;;  %v3135_v49 = vld [vmem:[#allocation6 + $0xc4] ss:$8 sps:$4 sm:$0xff]   ;;  %v3139_v53 = vld [vmem:[#allocation6 + $0xc0] ss:$8 sps:$4 sm:$0xff]  }
  0xcd   : > { %v3161_v50 = vld [vmem:[%s3910_s21 + $0x4] ss:$28 sps:$4 sm:$0xff]   ;;  %v3164_v52 = vld [vmem:[%s3910_s21 + $0xc] ss:$28 sps:$4 sm:$0xff]   ;;  %v3141_v55 = vld [vmem:[#allocation6 + $0xd4] ss:$8 sps:$4 sm:$0xff]  }
  0xce   : > { %1348 = vmatpush1.bf16.msra.mxu1 %v3091_v19  ;;  %v3137_v51 = vld [vmem:[#allocation6 + $0x1c4] ss:$8 sps:$4 sm:$0xff]   ;;  %1371 = vmatprep.mubr.bf16.mxu1 %v3161_v50  ;;  %v3140_v54 = vld [vmem:[#allocation6 + $0x1c0] ss:$8 sps:$4 sm:$0xff]   ;;  %v3143_v56 = vld [vmem:[#allocation6 + $0x1d4] ss:$8 sps:$4 sm:$0xff]  }
  0xcf   : > { %1461 = vmatpush1.bf16.msra.mxu0 %v3092_v20  ;;  %1349 = vmatprep.subr.bf16.mxu1 %v3093_v21  ;;  %v3145_v57 = vld [vmem:[#allocation6 + $0xd0] ss:$8 sps:$4 sm:$0xff]   ;;  %v3147_v59 = vld [vmem:[#allocation6 + $0xe4] ss:$8 sps:$4 sm:$0xff]   ;;  %v3151_v61 = vld [vmem:[#allocation6 + $0xe0] ss:$8 sps:$4 sm:$0xff]  }
  0xd0   : > { %1462 = vmatprep.subr.bf16.mxu0 %v3095_v22  ;;  %1484 = vmatprep.mubr.bf16.mxu0 %v3164_v52  ;;  %v3146_v58 = vld [vmem:[#allocation6 + $0x1d0] ss:$8 sps:$4 sm:$0xff]   ;;  %v3149_v60 = vld [vmem:[#allocation6 + $0x1e4] ss:$8 sps:$4 sm:$0xff]   ;;  %v3152_v62 = vld [vmem:[#allocation6 + $0x1e0] ss:$8 sps:$4 sm:$0xff]  }
  0xd1   : > { %v3153_v63 = vld [vmem:[#allocation6 + $0xf4] ss:$8 sps:$4 sm:$0xff]   ;;  %v3157_v1 = vld [vmem:[#allocation6 + $0xf0] ss:$8 sps:$4 sm:$0xff]   ;;  %v3167_v3 = vld [vmem:[#allocation6 + $0x204] ss:$8 sps:$4 sm:$0xff]  }
  0xd2   : > { %1350 = vmatpush1.bf16.msra.mxu1 %v3097_v23  ;;  %v3155_v0 = vld [vmem:[#allocation6 + $0x1f4] ss:$8 sps:$4 sm:$0xff]   ;;  %v3158_v2 = vld [vmem:[#allocation6 + $0x1f0] ss:$8 sps:$4 sm:$0xff]   ;;  %v3162_v5 = vld [vmem:[%s3910_s21 + $0x8] ss:$28 sps:$4 sm:$0xff]  }
  0xd3   : > { %1463 = vmatpush1.bf16.msra.mxu0 %v3098_v24  ;;  %1351 = vmatprep.subr.bf16.mxu1 %v3099_v25  ;;  %v3159_v4 = vld [vmem:[%s3910_s21] ss:$28 sps:$4 sm:$0xff]   ;;  %v3168_v10 = vld [vmem:[#allocation6 + $0x210] ss:$8 sps:$4 sm:$0xff]   ;;  %v3179_v11 = vld [vmem:[#allocation6 + $0x224] ss:$8 sps:$4 sm:$0xff]  }
  0xd4   : > { %1464 = vmatprep.subr.bf16.mxu0 %v3101_v26  ;;  %v3165_v6 = vld [vmem:[#allocation6 + $0x200] ss:$8 sps:$4 sm:$0xff]   ;;  %v3170_v7 = vld [vmem:[#allocation6 + $0x214] ss:$8 sps:$4 sm:$0xff]   ;;  %v3180_v18 = vld [vmem:[#allocation6 + $0x230] ss:$8 sps:$4 sm:$0xff]  }
  0xd5   : > { %v3171_v8 = vld [vmem:[%s3910_s21 + $0x3c] ss:$28 sps:$4 sm:$0xff]   ;;  %v3173_v9 = vld [vmem:[%s3910_s21 + $0x44] ss:$28 sps:$4 sm:$0xff]   ;;  %v3183_v16 = vld [vmem:[%s3910_s21 + $0x74] ss:$28 sps:$4 sm:$0xff]  }
  0xd6   : > { %1352 = vmatpush1.bf16.msra.mxu1 %v3103_v27  ;;  %v3175_v12 = vld [vmem:[%s3910_s21 + $0x38] ss:$28 sps:$4 sm:$0xff]   ;;  %v3176_v13 = vld [vmem:[%s3910_s21 + $0x40] ss:$28 sps:$4 sm:$0xff]   ;;  %v3191_v19 = vld [vmem:[#allocation6 + $0x244] ss:$8 sps:$4 sm:$0xff]  }
  0xd7   : > { %1465 = vmatpush1.bf16.msra.mxu0 %v3104_v28  ;;  %1353 = vmatprep.subr.bf16.mxu1 %v3105_v29  ;;  %v3177_v14 = vld [vmem:[#allocation6 + $0x220] ss:$8 sps:$4 sm:$0xff]   ;;  %v3182_v15 = vld [vmem:[#allocation6 + $0x234] ss:$8 sps:$4 sm:$0xff]   ;;  %v3187_v20 = vld [vmem:[%s3910_s21 + $0x70] ss:$28 sps:$4 sm:$0xff]  }
  0xd8   : > { %1466 = vmatprep.subr.bf16.mxu0 %v3107_v30  ;;  %v3185_v17 = vld [vmem:[%s3910_s21 + $0x7c] ss:$28 sps:$4 sm:$0xff]   ;;  %v3189_v22 = vld [vmem:[#allocation6 + $0x240] ss:$8 sps:$4 sm:$0xff]   ;;  %v3197_v25 = vld [vmem:[%s3910_s21 + $0xb4] ss:$28 sps:$4 sm:$0xff]  }
  0xd9   : > { %v3188_v21 = vld [vmem:[%s3910_s21 + $0x78] ss:$28 sps:$4 sm:$0xff]   ;;  %v3195_v24 = vld [vmem:[%s3910_s21 + $0xac] ss:$28 sps:$4 sm:$0xff]   ;;  %vm1314_vm0 = vcmask 130048   ;;  %s2526_s9 = sshll.u32 %s3906_s6, 7 }
  0xda   : > { %1354 = vmatpush1.bf16.msra.mxu1 %v3109_v31  ;;  %v3194_v23 = vld [vmem:[#allocation6 + $0x254] ss:$8 sps:$4 sm:$0xff]   ;;  %v3192_v26 = vld [vmem:[#allocation6 + $0x250] ss:$8 sps:$4 sm:$0xff]   ;;  %v3203_v27 = vld [vmem:[#allocation6 + $0x264] ss:$8 sps:$4 sm:$0xff]  }
  0xdb   : > { %1467 = vmatpush1.bf16.msra.mxu0 %v3110_v32  ;;  %1355 = vmatprep.subr.bf16.mxu1 %v3111_v33  ;;  %v3199_v28 = vld [vmem:[%s3910_s21 + $0xa8] ss:$28 sps:$4 sm:$0xff]   ;;  %v3200_v29 = vld [vmem:[%s3910_s21 + $0xb0] ss:$28 sps:$4 sm:$0xff]   ;;  %v3206_v31 = vld [vmem:[#allocation6 + $0x274] ss:$8 sps:$4 sm:$0xff]  }
  0xdc   : > { %1468 = vmatprep.subr.bf16.mxu0 %v3113_v34  ;;  %v3201_v30 = vld [vmem:[#allocation6 + $0x260] ss:$8 sps:$4 sm:$0xff]   ;;  %v3204_v34 = vld [vmem:[#allocation6 + $0x270] ss:$8 sps:$4 sm:$0xff]   ;;  %s4171_s11 = scalar_lea.vmem [#allocation14], %s2526_s9  ;;  %s2729_s25 = sshll.u32 %s3700_s8, 11 }
  0xdd   : > { %v3207_v32 = vld [vmem:[%s3910_s21 + $0xe4] ss:$28 sps:$4 sm:$0xff]   ;;  %v3209_v33 = vld [vmem:[%s3910_s21 + $0xec] ss:$28 sps:$4 sm:$0xff]   ;;  %v3228_v50 = vld [vmem:[#allocation6 + $0x2b0] ss:$8 sps:$4 sm:$0xff]   ;;  %s4214_s23 = scalar_lea.hbm %s4271_s7, %s2729_s25 }
  0xde   : > { %1356 = vmatpush1.bf16.msra.mxu1 %v3115_v35  ;;  %v3215_v35 = vld [vmem:[#allocation6 + $0x284] ss:$8 sps:$4 sm:$0xff]   ;;  %s2388_s15 = sshll.u32 %s4171_s11, 4  ;;  %s2375_s22 = scalar_lea.sflag [#allocation5], %s3906_s6  ;;  %s4216_s15 = int_to_ptr.vmem [resolvable:$true] %s2388_s15 }
  0xdf   : > { %1469 = vmatpush1.bf16.msra.mxu0 %v3116_v36  ;;  %1357 = vmatprep.subr.bf16.mxu1 %v3117_v37  ;;  %v3211_v36 = vld [vmem:[%s3910_s21 + $0xe0] ss:$28 sps:$4 sm:$0xff]   ;;  %v3212_v37 = vld [vmem:[%s3910_s21 + $0xe8] ss:$28 sps:$4 sm:$0xff]   ;;  %v3235_v52 = vld [vmem:[%s3910_s21 + $0x150] ss:$28 sps:$4 sm:$0xff]  }
  0xe0   : > { %1470 = vmatprep.subr.bf16.mxu0 %v3119_v38  ;;  %v3213_v38 = vld [vmem:[#allocation6 + $0x280] ss:$8 sps:$4 sm:$0xff]   ;;  %s3540_s14 = scalar_lea.vmem %s4216_s15, 2048  ;;  %p4290_p7 = scmp.ne.s32.totalorder %s4280_s24, 0 }
  0xe1   : > { %p3541_p2 = scmp.ne.s32.totalorder %s4216_s15, %s3540_s14  ;;  %s3633_s8 = smov [#allocation14]  }
  0xe2   : > { %1358 = vmatpush1.bf16.msra.mxu1 %v3121_v39  ;;  %v3218_v39 = vld [vmem:[#allocation6 + $0x294] ss:$8 sps:$4 sm:$0xff]   ;;  %s3544_s20 = sshll.u32 %s3633_s8, 4  ;;  %s3545_s20 = int_to_ptr.vmem [resolvable:$false] %s3544_s20 }
  0xe3   : > { %1471 = vmatpush1.bf16.msra.mxu0 %v3122_v40  ;;  %1359 = vmatprep.subr.bf16.mxu1 %v3123_v41  ;;  %v3219_v40 = vld [vmem:[%s3910_s21 + $0x11c] ss:$28 sps:$4 sm:$0xff]   ;;  %v3221_v41 = vld [vmem:[%s3910_s21 + $0x124] ss:$28 sps:$4 sm:$0xff]   ;;  %p3542_p10 = pnand %p3541_p2, %p4290_p7  ;;  %s3546_s18 = scalar_lea.vmem %s3545_s20, 4096 }
  0xe4   : > { %1472 = vmatprep.subr.bf16.mxu0 %v3125_v42  ;;  %v3216_v42 = vld [vmem:[#allocation6 + $0x290] ss:$8 sps:$4 sm:$0xff]   ;;  %p3547_p11 = scmp.lt.s32.totalorder %s4216_s15, %s3545_s20  ;;  %p3548_p12 = scmp.lt.s32.totalorder %s3546_s18, %s3540_s14 }
  0xe5   : > { %p3543_p1 = pneg %p3542_p10 }
  0xe6   : > { %1360 = vmatpush1.bf16.msra.mxu1 %v3127_v43  ;;  %v3223_v43 = vld [vmem:[%s3910_s21 + $0x118] ss:$28 sps:$4 sm:$0xff]   ;;  %p3549_p13 = por %p3548_p12, %p3547_p11 }
  0xe7   : > { %1473 = vmatpush1.bf16.msra.mxu0 %v3128_v44  ;;  %1361 = vmatprep.subr.bf16.mxu1 %v3129_v45  ;;  %v3227_v44 = vld [vmem:[#allocation6 + $0x2a4] ss:$8 sps:$4 sm:$0xff]   ;;  %v3224_v45 = vld [vmem:[%s3910_s21 + $0x120] ss:$28 sps:$4 sm:$0xff]  }
  0xe8   : > { %1474 = vmatprep.subr.bf16.mxu0 %v3131_v46  ;;  %v3225_v46 = vld [vmem:[#allocation6 + $0x2a0] ss:$8 sps:$4 sm:$0xff]   ;;  %p3550_p8 = pnand %p3549_p13, %p3543_p1 }
  0xea   : > { %1362 = vmatpush1.bf16.msra.mxu1 %v3133_v47  ;;  %v3230_v47 = vld [vmem:[#allocation6 + $0x2b4] ss:$8 sps:$4 sm:$0xff]  }
  0xeb   : > { %1475 = vmatpush1.bf16.msra.mxu0 %v3134_v48  ;;  %1363 = vmatprep.subr.bf16.mxu1 %v3135_v49  ;;  %v3231_v48 = vld [vmem:[%s3910_s21 + $0x154] ss:$28 sps:$4 sm:$0xff]   ;;  %v3233_v49 = vld [vmem:[%s3910_s21 + $0x15c] ss:$28 sps:$4 sm:$0xff]  }
  0xec   : > { %1476 = vmatprep.subr.bf16.mxu0 %v3137_v51  ;;  %v3239_v51 = vld [vmem:[#allocation6 + $0x2c4] ss:$8 sps:$4 sm:$0xff]  }
  0xee   : > { %1364 = vmatpush1.bf16.msra.mxu1 %v3139_v53  ;;  %v3236_v53 = vld [vmem:[%s3910_s21 + $0x158] ss:$28 sps:$4 sm:$0xff]  }
  0xef   : > { %1477 = vmatpush1.bf16.msra.mxu0 %v3140_v54  ;;  %1365 = vmatprep.subr.bf16.mxu1 %v3141_v55  ;;  %v3237_v54 = vld [vmem:[#allocation6 + $0x2c0] ss:$8 sps:$4 sm:$0xff]   ;;  %v3242_v55 = vld [vmem:[#allocation6 + $0x2d4] ss:$8 sps:$4 sm:$0xff]  }
  0xf0   : > { %1478 = vmatprep.subr.bf16.mxu0 %v3143_v56  ;;  %v3243_v56 = vld [vmem:[%s3910_s21 + $0x18c] ss:$28 sps:$4 sm:$0xff]  }
  0xf2   : > { %1366 = vmatpush1.bf16.msra.mxu1 %v3145_v57  ;;  %v3245_v57 = vld [vmem:[%s3910_s21 + $0x194] ss:$28 sps:$4 sm:$0xff]  }
  0xf3   : > { %1479 = vmatpush1.bf16.msra.mxu0 %v3146_v58  ;;  %1367 = vmatprep.subr.bf16.mxu1 %v3147_v59  ;;  %v3240_v58 = vld [vmem:[#allocation6 + $0x2d0] ss:$8 sps:$4 sm:$0xff]   ;;  %v3251_v59 = vld [vmem:[#allocation6 + $0x2e4] ss:$8 sps:$4 sm:$0xff]  }
  0xf4   : > { %1480 = vmatprep.subr.bf16.mxu0 %v3149_v60  ;;  %v3247_v60 = vld [vmem:[%s3910_s21 + $0x188] ss:$28 sps:$4 sm:$0xff]  }
  0xf6   : > { %1368 = vmatpush1.bf16.msra.mxu1 %v3151_v61  ;;  %v3248_v61 = vld [vmem:[%s3910_s21 + $0x190] ss:$28 sps:$4 sm:$0xff]  }
  0xf7   : > { %1481 = vmatpush1.bf16.msra.mxu0 %v3152_v62  ;;  %1369 = vmatprep.subr.bf16.mxu1 %v3153_v63  ;;  %v3249_v62 = vld [vmem:[#allocation6 + $0x2e0] ss:$8 sps:$4 sm:$0xff]   ;;  %v3254_v63 = vld [vmem:[#allocation6 + $0x2f4] ss:$8 sps:$4 sm:$0xff]  }
  0xf8   : > { %1482 = vmatprep.subr.bf16.mxu0 %v3155_v0  ;;  %v3257_v0 = vld [vmem:[%s3910_s21 + $0x14] ss:$28 sps:$4 sm:$0xff]  }
  0xfa   : > { %1370 = vmatpush1.bf16.msra.mxu1 %v3157_v1  ;;  %v3260_v1 = vld [vmem:[%s3910_s21 + $0xf4] ss:$28 sps:$4 sm:$0xff]  }
  0xfb   : > { %1483 = vmatpush1.bf16.msra.mxu0 %v3158_v2  ;;  %2794 = vmatprep.subr.bf16.mxu1 %v3167_v3  ;;  %v3252_v2 = vld [vmem:[#allocation6 + $0x2f0] ss:$8 sps:$4 sm:$0xff]  }
  0xfc   : > { %1565 = vmatprep.subr.bf16.mxu0 %v3167_v3  ;;  %v3263_v3 = vld [vmem:[#allocation6 + $0x304] ss:$8 sps:$4 sm:$0xff]  }
  0xfd   : > { %1372 = vmatmul.mubr.bf16.vlgmr.msra.gmra.mrb[0].mxu1 %v3159_v4  ;;  %v3255_v4 = vld [vmem:[%s3910_s21 + $0x10] ss:$28 sps:$4 sm:$0xff]  }
  0xfe   : > { %1485 = vmatmul.mubr.bf16.vlgmr.msra.gmra.mrb[0].mxu0 %v3162_v5  ;;  %2810 = vmatpush1.bf16.msra.mxu1 %v3165_v6  ;;  %v3258_v5 = vld [vmem:[%s3910_s21 + $0xf0] ss:$28 sps:$4 sm:$0xff]  }
  0xff   : > { %1566 = vmatpush1.bf16.msra.mxu0 %v3165_v6  ;;  %2795 = vmatprep.subr.bf16.mxu1 %v3170_v7  ;;  %v3261_v6 = vld [vmem:[#allocation6 + $0x300] ss:$8 sps:$4 sm:$0xff]  }
 0x100   : > { %1567 = vmatprep.subr.bf16.mxu0 %v3170_v7  ;;  %1381 = vmatprep.mubr.bf16.mxu1 %v3171_v8  ;;  %v3264_v7 = vld [vmem:[%s3910_s21 + $0x4c] ss:$28 sps:$4 sm:$0xff]  }
 0x101   : > { %1494 = vmatprep.mubr.bf16.mxu0 %v3173_v9  ;;  %v3266_v8 = vld [vmem:[%s3910_s21 + $0x12c] ss:$28 sps:$4 sm:$0xff]  }
 0x102   : > { %2811 = vmatpush1.bf16.msra.mxu1 %v3168_v10  ;;  %v3268_v9 = vld [vmem:[%s3910_s21 + $0x48] ss:$28 sps:$4 sm:$0xff]  }
 0x103   : > { %1568 = vmatpush1.bf16.msra.mxu0 %v3168_v10  ;;  %2796 = vmatprep.subr.bf16.mxu1 %v3179_v11  ;;  %v3269_v10 = vld [vmem:[%s3910_s21 + $0x128] ss:$28 sps:$4 sm:$0xff]  }
 0x104   : > { %1569 = vmatprep.subr.bf16.mxu0 %v3179_v11  ;;  %v3270_v11 = vld [vmem:[%s3910_s21 + $0x84] ss:$28 sps:$4 sm:$0xff]  }
 0x105   : > { %1382 = vmatmul.mubr.bf16.gmra.mrb[4].mxu1 %v3175_v12  ;;  %v3272_v12 = vld [vmem:[%s3910_s21 + $0x164] ss:$28 sps:$4 sm:$0xff]  }
 0x106   : > { %1495 = vmatmul.mubr.bf16.gmra.mrb[4].mxu0 %v3176_v13  ;;  %2812 = vmatpush1.bf16.msra.mxu1 %v3177_v14  ;;  %v3274_v13 = vld [vmem:[%s3910_s21 + $0x80] ss:$28 sps:$4 sm:$0xff]  }
 0x107   : > { %1570 = vmatpush1.bf16.msra.mxu0 %v3177_v14  ;;  %2797 = vmatprep.subr.bf16.mxu1 %v3182_v15  ;;  %v3275_v14 = vld [vmem:[%s3910_s21 + $0x160] ss:$28 sps:$4 sm:$0xff]  }
 0x108   : > { %1571 = vmatprep.subr.bf16.mxu0 %v3182_v15  ;;  %1391 = vmatprep.mubr.bf16.mxu1 %v3183_v16  ;;  %v3276_v15 = vld [vmem:[%s3910_s21 + $0xbc] ss:$28 sps:$4 sm:$0xff]  }
 0x109   : > { %1504 = vmatprep.mubr.bf16.mxu0 %v3185_v17  ;;  %v3278_v16 = vld [vmem:[%s3910_s21 + $0x19c] ss:$28 sps:$4 sm:$0xff]  }
 0x10a   : > { %2813 = vmatpush1.bf16.msra.mxu1 %v3180_v18  ;;  %v3280_v17 = vld [vmem:[%s3910_s21 + $0xb8] ss:$28 sps:$4 sm:$0xff]  }
 0x10b   : > { %1572 = vmatpush1.bf16.msra.mxu0 %v3180_v18  ;;  %2798 = vmatprep.subr.bf16.mxu1 %v3191_v19  ;;  %v3281_v18 = vld [vmem:[%s3910_s21 + $0x198] ss:$28 sps:$4 sm:$0xff]  }
 0x10c   : > { %1573 = vmatprep.subr.bf16.mxu0 %v3191_v19  ;;  %v3632_v19 = vmov 0  }
 0x10d   : > { %1392 = vmatmul.mubr.bf16.gmra.mrb[8].mxu1 %v3187_v20  ;;  %v3282_v20 = vld [vmem:[%s3910_s21 + $0x18] ss:$28 sps:$4 sm:$0xff]  }
 0x10e   : > { %1505 = vmatmul.mubr.bf16.gmra.mrb[8].mxu0 %v3188_v21  ;;  %2814 = vmatpush1.bf16.msra.mxu1 %v3189_v22  ;;  %v3283_v21 = vld [vmem:[%s3910_s21 + $0x50] ss:$28 sps:$4 sm:$0xff]  }
 0x10f   : > { %1574 = vmatpush1.bf16.msra.mxu0 %v3189_v22  ;;  %2799 = vmatprep.subr.bf16.mxu1 %v3194_v23  ;;  %v3284_v22 = vld [vmem:[%s3910_s21 + $0x88] ss:$28 sps:$4 sm:$0xff]  }
 0x110   : > { %1575 = vmatprep.subr.bf16.mxu0 %v3194_v23  ;;  %1401 = vmatprep.mubr.bf16.mxu1 %v3195_v24  ;;  %v3285_v23 = vld [vmem:[%s3910_s21 + $0xc0] ss:$28 sps:$4 sm:$0xff]   ;;  %v3286_v24 = vld [vmem:[%s3910_s21 + $0xf8] ss:$28 sps:$4 sm:$0xff]  }
 0x111   : > { %1514 = vmatprep.mubr.bf16.mxu0 %v3197_v25  ;;  %v3287_v25 = vld [vmem:[%s3910_s21 + $0x130] ss:$28 sps:$4 sm:$0xff]  }
 0x112   : > { %2815 = vmatpush1.bf16.msra.mxu1 %v3192_v26 }
 0x113   : > { %1576 = vmatpush1.bf16.msra.mxu0 %v3192_v26  ;;  %2800 = vmatprep.subr.bf16.mxu1 %v3203_v27  ;;  %v3288_v26 = vld [vmem:[%s3910_s21 + $0x168] ss:$28 sps:$4 sm:$0xff]  }
 0x114   : > { %1577 = vmatprep.subr.bf16.mxu0 %v3203_v27  ;;  %v3289_v27 = vld [vmem:[%s3910_s21 + $0x1a0] ss:$28 sps:$4 sm:$0xff]  }
 0x115   : > { %1402 = vmatmul.mubr.bf16.gmra.mrb[12].mxu1 %v3199_v28  ;;  %v3290_v28 = vld [vmem:[#allocation9 + $0x40] sm:$0xff]  }
 0x116   : > { %1515 = vmatmul.mubr.bf16.gmra.mrb[12].mxu0 %v3200_v29  ;;  %2816 = vmatpush1.bf16.msra.mxu1 %v3201_v30  ;;  %v3291_v29 = vld [vmem:[#allocation9] sm:$0xff]  }
 0x117   : > { %1578 = vmatpush1.bf16.msra.mxu0 %v3201_v30  ;;  %2801 = vmatprep.subr.bf16.mxu1 %v3206_v31  ;;  %v3292_v30 = vld [vmem:[#allocation9 + $0x48] sm:$0xff]  }
 0x118   : > { %1579 = vmatprep.subr.bf16.mxu0 %v3206_v31  ;;  %1411 = vmatprep.mubr.bf16.mxu1 %v3207_v32  ;;  %v3293_v31 = vld [vmem:[#allocation9 + $0x8] sm:$0xff]   ;;  %v3294_v32 = vld [vmem:[#allocation9 + $0x50] sm:$0xff]  }
 0x119   : > { %1524 = vmatprep.mubr.bf16.mxu0 %v3209_v33  ;;  %v3295_v33 = vld [vmem:[#allocation9 + $0x10] sm:$0xff]  }
 0x11a   : > { %2817 = vmatpush1.bf16.msra.mxu1 %v3204_v34 }
 0x11b   : > { %1580 = vmatpush1.bf16.msra.mxu0 %v3204_v34  ;;  %2802 = vmatprep.subr.bf16.mxu1 %v3215_v35  ;;  %v3296_v34 = vld [vmem:[#allocation9 + $0x58] sm:$0xff]  }
 0x11c   : > { %1581 = vmatprep.subr.bf16.mxu0 %v3215_v35  ;;  %v3297_v35 = vld [vmem:[#allocation9 + $0x18] sm:$0xff]  }
 0x11d   : > { %1412 = vmatmul.mubr.bf16.gmra.mrb[16].mxu1 %v3211_v36  ;;  %v3298_v36 = vld [vmem:[#allocation9 + $0x60] sm:$0xff]  }
 0x11e   : > { %1525 = vmatmul.mubr.bf16.gmra.mrb[16].mxu0 %v3212_v37  ;;  %2818 = vmatpush1.bf16.msra.mxu1 %v3213_v38  ;;  %v3299_v37 = vld [vmem:[#allocation9 + $0x20] sm:$0xff]  }
 0x11f   : > { %1582 = vmatpush1.bf16.msra.mxu0 %v3213_v38  ;;  %2803 = vmatprep.subr.bf16.mxu1 %v3218_v39  ;;  %v3300_v38 = vld [vmem:[#allocation9 + $0x68] sm:$0xff]  }
 0x120   : > { %1583 = vmatprep.subr.bf16.mxu0 %v3218_v39  ;;  %1421 = vmatprep.mubr.bf16.mxu1 %v3219_v40  ;;  %v3301_v39 = vld [vmem:[#allocation9 + $0x28] sm:$0xff]   ;;  %v3302_v40 = vld [vmem:[#allocation9 + $0x70] sm:$0xff]  }
 0x121   : > { %1534 = vmatprep.mubr.bf16.mxu0 %v3221_v41  ;;  %v3303_v41 = vld [vmem:[#allocation9 + $0x30] sm:$0xff]  }
 0x122   : > { %2819 = vmatpush1.bf16.msra.mxu1 %v3216_v42 }
 0x123   : > { %1584 = vmatpush1.bf16.msra.mxu0 %v3216_v42  ;;  %2804 = vmatprep.subr.bf16.mxu1 %v3227_v44  ;;  %v3304_v42 = vld [vmem:[#allocation9 + $0x78] sm:$0xff]  }
 0x124   : > { %1585 = vmatprep.subr.bf16.mxu0 %v3227_v44 }
 0x125   : > { %1422 = vmatmul.mubr.bf16.gmra.mrb[20].mxu1 %v3223_v43  ;;  %v3305_v43 = vld [vmem:[#allocation9 + $0x38] sm:$0xff]  }
 0x126   : > { %1535 = vmatmul.mubr.bf16.gmra.mrb[20].mxu0 %v3224_v45  ;;  %2820 = vmatpush1.bf16.msra.mxu1 %v3225_v46 }
 0x127   : > { %1586 = vmatpush1.bf16.msra.mxu0 %v3225_v46  ;;  %2805 = vmatprep.subr.bf16.mxu1 %v3230_v47 }
 0x128   : > { %1587 = vmatprep.subr.bf16.mxu0 %v3230_v47  ;;  %1431 = vmatprep.mubr.bf16.mxu1 %v3231_v48 }
 0x129   : > { %1544 = vmatprep.mubr.bf16.mxu0 %v3233_v49 }
 0x12a   : > { %2821 = vmatpush1.bf16.msra.mxu1 %v3228_v50 }
 0x12b   : > { %1588 = vmatpush1.bf16.msra.mxu0 %v3228_v50  ;;  %2806 = vmatprep.subr.bf16.mxu1 %v3239_v51 }
 0x12c   : > { %1589 = vmatprep.subr.bf16.mxu0 %v3239_v51 }
 0x12d   : > { %1432 = vmatmul.mubr.bf16.gmra.mrb[24].mxu1 %v3235_v52 }
 0x12e   : > { %1545 = vmatmul.mubr.bf16.gmra.mrb[24].mxu0 %v3236_v53  ;;  %2822 = vmatpush1.bf16.msra.mxu1 %v3237_v54  ;;  %v534_v53 = vlaneseq }
 0x12f   : > { %1590 = vmatpush1.bf16.msra.mxu0 %v3237_v54  ;;  %2807 = vmatprep.subr.bf16.mxu1 %v3242_v55 }
 0x130   : > { %1591 = vmatprep.subr.bf16.mxu0 %v3242_v55  ;;  %1441 = vmatprep.mubr.bf16.mxu1 %v3243_v56 }
 0x131   : > { %1554 = vmatprep.mubr.bf16.mxu0 %v3245_v57  ;;  %v535_v57 = vshrl.u32 %v534_v53, 7 }
 0x132   : > { %2823 = vmatpush1.bf16.msra.mxu1 %v3240_v58 }
 0x133   : > { %1592 = vmatpush1.bf16.msra.mxu0 %v3240_v58  ;;  %2808 = vmatprep.subr.bf16.mxu1 %v3251_v59 }
 0x134   : > { %1593 = vmatprep.subr.bf16.mxu0 %v3251_v59  ;;  %v536_v59 = vsub.s32 0, %v535_v57 }
 0x135   : > { %1442 = vmatmul.mubr.bf16.gmra.mrb[28].mxu1 %v3247_v60 }
 0x136   : > { %1555 = vmatmul.mubr.bf16.gmra.mrb[28].mxu0 %v3248_v61  ;;  %2824 = vmatpush1.bf16.msra.mxu1 %v3249_v62  ;;  %v532_v61 = vld [vmem:[#allocation8] sm:$0x3] }
 0x137   : > { %1594 = vmatpush1.bf16.msra.mxu0 %v3249_v62  ;;  %2809 = vmatprep.subr.bf16.mxu1 %v3254_v63  ;;  %v540_v62 = vsub.s32 1, %v535_v57 }
 0x138   : > { %1595 = vmatprep.subr.bf16.mxu0 %v3254_v63  ;;  %1597 = vmatprep.mubr.bf16.mxu0 %v3257_v0 }
 0x139   : > { %1637 = vmatprep.mubr.bf16.mxu1 %v3260_v1  ;;  %v4024_v1 = vrot.slane %v532_v61, %v536_v59 }
 0x13a   : > { %2825 = vmatpush1.bf16.msra.mxu1 %v3252_v2 }
 0x13b   : > { %1596 = vmatpush1.bf16.msra.mxu0 %v3252_v2  ;;  %2730 = vmatprep.subr.bf16.mxu1 %v3290_v28  ;;  %v4026_v2 = vrot.slane %v532_v61, %v540_v62 }
 0x13c   : > { %1678 = vmatprep.subr.bf16.mxu0 %v3263_v3 }
 0x13d   : > { %1638 = vmatmul.mubr.bf16.vlgmr.msra.gmra.mrb[32].mxu1 %v3258_v5 }
 0x13e   : > { %1598 = vmatmul.mubr.bf16.vlgmr.msra.gmra.mrb[0].mxu0 %v3255_v4  ;;  %1647 = vmatprep.mubr.bf16.mxu1 %v3266_v8 }
 0x13f   : > { %1679 = vmatpush1.bf16.msra.mxu0 %v3261_v6  ;;  %1607 = vmatprep.mubr.bf16.mxu0 %v3264_v7 }
 0x140   : > { %2731 = vmatpush3.bf16.msra.mxu1 %v3291_v29 }
 0x141   : > { %2732 = vmatprep.subr.bf16.mxu1 %v3292_v30 }
 0x144   : > { %2733 = vmatpush3.bf16.msra.mxu1 %v3293_v31 }
 0x145   : > { %1648 = vmatmul.mubr.bf16.gmra.mrb[36].mxu1 %v3269_v10  ;;  %2734 = vmatprep.subr.bf16.mxu1 %v3294_v32 }
 0x146   : > { %1608 = vmatmul.mubr.bf16.gmra.mrb[4].mxu0 %v3268_v9  ;;  %1657 = vmatprep.mubr.bf16.mxu1 %v3272_v12 }
 0x147   : > { %1617 = vmatprep.mubr.bf16.mxu0 %v3270_v11 }
 0x148   : > { %2735 = vmatpush3.bf16.msra.mxu1 %v3295_v33 }
 0x149   : > { %2736 = vmatprep.subr.bf16.mxu1 %v3296_v34 }
 0x14c   : > { %2737 = vmatpush3.bf16.msra.mxu1 %v3297_v35 }
 0x14d   : > { %1658 = vmatmul.mubr.bf16.gmra.mrb[40].mxu1 %v3275_v14  ;;  %2738 = vmatprep.subr.bf16.mxu1 %v3298_v36 }
 0x14e   : > { %1618 = vmatmul.mubr.bf16.gmra.mrb[8].mxu0 %v3274_v13  ;;  %1667 = vmatprep.mubr.bf16.mxu1 %v3278_v16 }
 0x14f   : > { %1627 = vmatprep.mubr.bf16.mxu0 %v3276_v15 }
 0x150   : > { %2739 = vmatpush3.bf16.msra.mxu1 %v3299_v37 }
 0x151   : > { %2740 = vmatprep.subr.bf16.mxu1 %v3300_v38 }
 0x154   : > { %2741 = vmatpush3.bf16.msra.mxu1 %v3301_v39 }
 0x155   : > { %1668 = vmatmul.mubr.bf16.gmra.mrb[44].mxu1 %v3281_v18  ;;  %2742 = vmatprep.subr.bf16.mxu1 %v3302_v40 }
 0x156   : > { %1628 = vmatmul.mubr.bf16.gmra.mrb[12].mxu0 %v3280_v17 }
 0x157   : > { %1710 = vmatprep.mubr.bf16.mxu0 %v3632_v19 }
 0x158   : > { %2743 = vmatpush3.bf16.msra.mxu1 %v3303_v41 }
 0x159   : > { %2744 = vmatprep.subr.bf16.mxu1 %v3304_v42 }
 0x15c   : > { %2745 = vmatpush3.bf16.msra.mxu1 %v3305_v43 }
 0x15e   : > { %2681 = vmatmul.mubr.msk.bf16.vlgmr.msra.gmra.mrb[0].mxu0 %vm1314_vm0, %v3282_v20 }
 0x15f   : > { %1720 = vmatprep.mubr.bf16.mxu0 %v3632_v19 }
 0x166   : > { %2682 = vmatmul.mubr.msk.bf16.gmra.mrb[4].mxu0 %vm1314_vm0, %v3283_v21 }
 0x167   : > { %1730 = vmatprep.mubr.bf16.mxu0 %v3632_v19 }
 0x16e   : > { %2683 = vmatmul.mubr.msk.bf16.gmra.mrb[8].mxu0 %vm1314_vm0, %v3284_v22 }
 0x16f   : > { %1740 = vmatprep.mubr.bf16.mxu0 %v3632_v19 }
 0x176   : > { %2684 = vmatmul.mubr.msk.bf16.gmra.mrb[12].mxu0 %vm1314_vm0, %v3285_v23 }
 0x177   : > { %1750 = vmatprep.mubr.bf16.mxu0 %v3632_v19 }
 0x17e   : > { %2685 = vmatmul.mubr.msk.bf16.gmra.mrb[32].mxu0 %vm1314_vm0, %v3286_v24 }
 0x17f   : > { %1760 = vmatprep.mubr.bf16.mxu0 %v3632_v19 }
 0x186   : > { %2686 = vmatmul.mubr.msk.bf16.gmra.mrb[36].mxu0 %vm1314_vm0, %v3287_v25 }
 0x187   : > { %1770 = vmatprep.mubr.bf16.mxu0 %v3632_v19 }
 0x18e   : > { %2687 = vmatmul.mubr.msk.bf16.gmra.mrb[40].mxu0 %vm1314_vm0, %v3288_v26 }
 0x18f   : > { %1780 = vmatprep.mubr.bf16.mxu0 %v3632_v19 }
 0x196   : > { %2688 = vmatmul.mubr.msk.bf16.gmra.mrb[44].mxu0 %vm1314_vm0, %v3289_v27 }
 0x1d0   : > { %v3992_v44 = vpop.f32.mrb[0].mxu1 }
 0x1d1   : > { %v3994_v45 = vpop.f32.mrb[1].mxu1 }
 0x1d2   : > { %v3996_v46 = vpop.f32.mrb[2].mxu1 }
 0x1d3   : > { %v3998_v47 = vpop.f32.mrb[3].mxu1 }
 0x1d8   : > { %v4000_v48 = vpop.f32.mrb[4].mxu1 }
 0x1d9   : > { %v4002_v49 = vpop.f32.mrb[5].mxu1 }
 0x1da   : > { %v4004_v50 = vpop.f32.mrb[6].mxu1 }
 0x1db   : > { %v4006_v51 = vpop.f32.mrb[7].mxu1 }
 0x1e0   : > { %v4008_v52 = vpop.f32.mrb[8].mxu1 }
 0x1e1   : > { %v4010_v54 = vpop.f32.mrb[9].mxu1 }
 0x1e2   : > { %v4012_v55 = vpop.f32.mrb[10].mxu1 }
 0x1e3   : > { %v4014_v56 = vpop.f32.mrb[11].mxu1 }
 0x1e8   : > { %v4016_v58 = vpop.f32.mrb[12].mxu1 }
 0x1e9   : > { %v4018_v60 = vpop.f32.mrb[13].mxu1 }
 0x1ea   : > { %v4020_v63 = vpop.f32.mrb[14].mxu1 }
 0x1eb   : > { %v4022_v0 = vpop.f32.mrb[15].mxu1 }
 0x1f0   : > { %v1413_v3 = vpop.f32.mrb[16].mxu1 }
 0x1f1   : > { %v1526_v4 = vpop.f32.mrb[16].mxu0  ;;  %v1414_v5 = vadd.f32 %v1413_v3, %v4024_v1  ;;  %v1415_v6 = vpop.f32.mrb[17].mxu1 }
 0x1f2   : > { %v1528_v7 = vpop.f32.mrb[17].mxu0  ;;  %v1416_v8 = vadd.f32 %v1415_v6, %v4026_v2  ;;  %v1417_v9 = vpop.f32.mrb[18].mxu1 }
 0x1f3   : > { %v1530_v10 = vpop.f32.mrb[18].mxu0  ;;  %v1527_v11 = vadd.f32 %v1526_v4, %v1414_v5  ;;  %v1418_v12 = vadd.f32 %v1417_v9, %v4024_v1  ;;  %v1419_v13 = vpop.f32.mrb[19].mxu1 }
 0x1f4   : > { %v1532_v14 = vpop.f32.mrb[19].mxu0  ;;  %v1529_v15 = vadd.f32 %v1528_v7, %v1416_v8  ;;  %v1420_v16 = vadd.f32 %v1419_v13, %v4026_v2 }
 0x1f5   : > { %v1531_v17 = vadd.f32 %v1530_v10, %v1418_v12 }
 0x1f6   : > { %v1533_v18 = vadd.f32 %v1532_v14, %v1420_v16 }
 0x1f8   : > { %v1423_v19 = vpop.f32.mrb[20].mxu1 }
 0x1f9   : > { %v1536_v20 = vpop.f32.mrb[20].mxu0  ;;  %v1424_v21 = vadd.f32 %v1423_v19, %v4024_v1  ;;  %v1425_v22 = vpop.f32.mrb[21].mxu1 }
 0x1fa   : > { %v1538_v23 = vpop.f32.mrb[21].mxu0  ;;  %v1426_v24 = vadd.f32 %v1425_v22, %v4026_v2  ;;  %v1427_v25 = vpop.f32.mrb[22].mxu1 }
 0x1fb   : > { %v1540_v26 = vpop.f32.mrb[22].mxu0  ;;  %v1537_v27 = vadd.f32 %v1536_v20, %v1424_v21  ;;  %v1428_v28 = vadd.f32 %v1427_v25, %v4024_v1  ;;  %v1429_v29 = vpop.f32.mrb[23].mxu1 }
 0x1fc   : > { %v1542_v30 = vpop.f32.mrb[23].mxu0  ;;  %v1539_v31 = vadd.f32 %v1538_v23, %v1426_v24  ;;  %v1430_v32 = vadd.f32 %v1429_v29, %v4026_v2 }
 0x1fd   : > { %v1541_v33 = vadd.f32 %v1540_v26, %v1428_v28 }
 0x1fe   : > { %v1543_v34 = vadd.f32 %v1542_v30, %v1430_v32 }
 0x200   : > { %v1433_v35 = vpop.f32.mrb[24].mxu1 }
 0x201   : > { %v1546_v36 = vpop.f32.mrb[24].mxu0  ;;  %v1434_v37 = vadd.f32 %v1433_v35, %v4024_v1  ;;  %v1435_v38 = vpop.f32.mrb[25].mxu1 }
 0x202   : > { %v1548_v39 = vpop.f32.mrb[25].mxu0  ;;  %v1436_v40 = vadd.f32 %v1435_v38, %v4026_v2  ;;  %v1437_v41 = vpop.f32.mrb[26].mxu1 }
 0x203   : > { %v1550_v42 = vpop.f32.mrb[26].mxu0  ;;  %v1547_v43 = vadd.f32 %v1546_v36, %v1434_v37  ;;  %v1438_v53 = vadd.f32 %v1437_v41, %v4024_v1  ;;  %v1439_v57 = vpop.f32.mrb[27].mxu1 }
 0x204   : > { %v1552_v59 = vpop.f32.mrb[27].mxu0  ;;  %v1549_v61 = vadd.f32 %v1548_v39, %v1436_v40  ;;  %v1440_v62 = vadd.f32 %v1439_v57, %v4026_v2 }
 0x205   : > { %v1551_v3 = vadd.f32 %v1550_v42, %v1438_v53 }
 0x206   : > { %v1553_v4 = vadd.f32 %v1552_v59, %v1440_v62 }
 0x208   : > { %v1443_v5 = vpop.f32.mrb[28].mxu1 }
 0x209   : > { %v1556_v6 = vpop.f32.mrb[28].mxu0  ;;  %v1444_v7 = vadd.f32 %v1443_v5, %v4024_v1  ;;  %v1445_v8 = vpop.f32.mrb[29].mxu1 }
 0x20a   : > { %v1558_v9 = vpop.f32.mrb[29].mxu0  ;;  %v1446_v10 = vadd.f32 %v1445_v8, %v4026_v2  ;;  %v1447_v12 = vpop.f32.mrb[30].mxu1 }
 0x20b   : > { %v1560_v13 = vpop.f32.mrb[30].mxu0  ;;  %v1557_v14 = vadd.f32 %v1556_v6, %v1444_v7  ;;  %v1448_v16 = vadd.f32 %v1447_v12, %v4024_v1  ;;  %v1449_v19 = vpop.f32.mrb[31].mxu1 }
 0x20c   : > { %v1562_v20 = vpop.f32.mrb[31].mxu0  ;;  %v1559_v21 = vadd.f32 %v1558_v9, %v1446_v10  ;;  %v1450_v22 = vadd.f32 %v1449_v19, %v4026_v2  ;;  %v1378_v10 = vadd.f32 %v3996_v46, %v4024_v1  ;;  %v1384_v46 = vadd.f32 %v4000_v48, %v4024_v1 }
 0x20d   : > { %v1561_v23 = vadd.f32 %v1560_v13, %v1448_v16 }
 0x20e   : > { %v1563_v24 = vadd.f32 %v1562_v20, %v1450_v22 }
 0x210   : > { %v1639_v25 = vpop.f32.mrb[32].mxu1 }
 0x211   : > { %v4044_v26 = vadd.f32 %v1639_v25, %v1527_v11  ;;  %v1641_v28 = vpop.f32.mrb[33].mxu1 }
 0x212   : > { %v4046_v29 = vadd.f32 %v1641_v28, %v1529_v15  ;;  %v1643_v30 = vpop.f32.mrb[34].mxu1 }
 0x213   : > { %v4048_v32 = vadd.f32 %v1643_v30, %v1531_v17  ;;  %v1645_v35 = vpop.f32.mrb[35].mxu1 }
 0x214   : > { %v4050_v36 = vadd.f32 %v1645_v35, %v1533_v18 }
 0x218   : > { %v1649_v37 = vpop.f32.mrb[36].mxu1 }
 0x219   : > { %v4052_v38 = vadd.f32 %v1649_v37, %v1537_v27  ;;  %v1651_v39 = vpop.f32.mrb[37].mxu1 }
 0x21a   : > { %v4054_v40 = vadd.f32 %v1651_v39, %v1539_v31  ;;  %v1653_v41 = vpop.f32.mrb[38].mxu1 }
 0x21b   : > { %v4056_v42 = vadd.f32 %v1653_v41, %v1541_v33  ;;  %v1655_v11 = vpop.f32.mrb[39].mxu1  ;;  %v1388_v41 = vadd.f32 %v4004_v50, %v4024_v1 }
 0x21c   : > { %v4058_v53 = vadd.f32 %v1655_v11, %v1543_v34 }
 0x220   : > { %v1659_v15 = vpop.f32.mrb[40].mxu1 }
 0x221   : > { %v4060_v57 = vadd.f32 %v1659_v15, %v1547_v43  ;;  %v1661_v17 = vpop.f32.mrb[41].mxu1 }
 0x222   : > { %v4062_v59 = vadd.f32 %v1661_v17, %v1549_v61  ;;  %v1663_v18 = vpop.f32.mrb[42].mxu1  ;;  %v1374_v61 = vadd.f32 %v3992_v44, %v4024_v1 }
 0x223   : > { %v4064_v62 = vadd.f32 %v1663_v18, %v1551_v3  ;;  %v1665_v27 = vpop.f32.mrb[43].mxu1  ;;  %v1376_v3 = vadd.f32 %v3994_v45, %v4026_v2  ;;  %v1390_v18 = vadd.f32 %v4006_v51, %v4026_v2 }
 0x224   : > { %v4066_v5 = vadd.f32 %v1665_v27, %v1553_v4 }
 0x228   : > { %v1669_v31 = vpop.f32.mrb[44].mxu1 }
 0x229   : > { %v4068_v6 = vadd.f32 %v1669_v31, %v1557_v14  ;;  %v1671_v33 = vpop.f32.mrb[45].mxu1  ;;  %v1380_v14 = vadd.f32 %v3998_v47, %v4026_v2  ;;  %v1386_v47 = vadd.f32 %v4002_v49, %v4026_v2 }
 0x22a   : > { %v4070_v7 = vadd.f32 %v1671_v33, %v1559_v21  ;;  %v1673_v34 = vpop.f32.mrb[46].mxu1 }
 0x22b   : > { %v4072_v8 = vadd.f32 %v1673_v34, %v1561_v23  ;;  %v1675_v43 = vpop.f32.mrb[47].mxu1 }
 0x22c   : > { %v4074_v9 = vadd.f32 %v1675_v43, %v1563_v24 }
 0x231   : > { %v1712_v4 = vpop.f32.mrb[0].mxu0 }
 0x232   : > { %v2827_v12 = vadd.f32 %v1712_v4, %v1374_v61  ;;  %v1714_v13 = vpop.f32.mrb[1].mxu0 }
 0x233   : > { %v2829_v16 = vadd.f32 %v1714_v13, %v1376_v3  ;;  %v1716_v19 = vpop.f32.mrb[2].mxu0  ;;  %v1394_v3 = vadd.f32 %v4008_v52, %v4024_v1 }
 0x234   : > { %v1823_v20 = vmul.f32 0.01, %v2827_v12  ;;  %v2831_v21 = vadd.f32 %v1716_v19, %v1378_v10  ;;  %v1718_v22 = vpop.f32.mrb[3].mxu0  ;;  %vm1791_vm1 = vcmp.ge.f32.partialorder %v2827_v12, 0.0  ;;  %v1396_v10 = vadd.f32 %v4010_v54, %v4026_v2 }
 0x235   : > { %v1824_v23 = vmul.f32 0.01, %v2829_v16  ;;  %v2833_v44 = vadd.f32 %v1718_v22, %v1380_v14  ;;  %vm1792_vm2 = vcmp.ge.f32.partialorder %v2829_v16, 0.0  ;;  %v1398_v19 = vadd.f32 %v4012_v55, %v4024_v1 }
 0x236   : > { %vm1793_vm3 = vcmp.ge.f32.partialorder %v2831_v21, 0.0  ;;  %v1825_v45 = vmul.f32 0.01, %v2831_v21  ;;  %v1855_v25 = vsel %vm1791_vm1, %v2827_v12, %v1823_v20 }
 0x237   : > { %vm1794_vm4 = vcmp.ge.f32.partialorder %v2833_v44, 0.0  ;;  %v1826_v24 = vmul.f32 0.01, %v2833_v44  ;;  %v1856_v37 = vsel %vm1792_vm2, %v2829_v16, %v1824_v23  ;;  %v1400_v23 = vadd.f32 %v4014_v56, %v4026_v2 }
 0x238   : > { %v1857_v28 = vsel %vm1793_vm3, %v2831_v21, %v1825_v45 }
 0x239   : > { %v1887_v30 = vpack.c.bf16 %v1857_v28, %v1855_v25  ;;  %v1722_v35 = vpop.f32.mrb[4].mxu0  ;;  %v1858_v39 = vsel %vm1794_vm4, %v2833_v44, %v1826_v24 }
 0x23a   : > { %v2835_v11 = vadd.f32 %v1722_v35, %v1384_v46  ;;  %v1724_v15 = vpop.f32.mrb[5].mxu0  ;;  %v1888_v17 = vpack.c.bf16 %v1858_v39, %v1856_v37  ;;  %v1406_v35 = vadd.f32 %v4018_v60, %v4026_v2 }
 0x23b   : > { %v2837_v27 = vadd.f32 %v1724_v15, %v1386_v47  ;;  %v1726_v48 = vpop.f32.mrb[6].mxu0  ;;  %v1404_v47 = vadd.f32 %v4016_v58, %v4024_v1  ;;  %v1408_v15 = vadd.f32 %v4020_v63, %v4024_v1 }
 0x23c   : > { %v1827_v31 = vmul.f32 0.01, %v2835_v11  ;;  %v2839_v33 = vadd.f32 %v1726_v48, %v1388_v41  ;;  %v1728_v34 = vpop.f32.mrb[7].mxu0  ;;  %2070 = vmatprep.mubr.bf16.mxu1 %v1888_v17  ;;  %vm1795_vm5 = vcmp.ge.f32.partialorder %v2835_v11, 0.0  ;;  %v1410_v48 = vadd.f32 %v4022_v0, %v4026_v2 }
 0x23d   : > { %v1828_v49 = vmul.f32 0.01, %v2837_v27  ;;  %v2841_v43 = vadd.f32 %v1728_v34, %v1390_v18  ;;  %2071 = vmatmul.mubr.bf16.vlgmr.msra.gmra.mrb[48].mxu1 %v1887_v30  ;;  %vm1796_vm6 = vcmp.ge.f32.partialorder %v2837_v27, 0.0 }
 0x23e   : > { %vm1797_vm7 = vcmp.ge.f32.partialorder %v2839_v33, 0.0  ;;  %v1829_v61 = vmul.f32 0.01, %v2839_v33  ;;  %v1859_v4 = vsel %vm1795_vm5, %v2835_v11, %v1827_v31 }
 0x23f   : > { %vm1798_vm8 = vcmp.ge.f32.partialorder %v2841_v43, 0.0  ;;  %v1830_v50 = vmul.f32 0.01, %v2841_v43  ;;  %v1860_v13 = vsel %vm1796_vm6, %v2837_v27, %v1828_v49 }
 0x240   : > { %v1861_v51 = vsel %vm1797_vm7, %v2839_v33, %v1829_v61 }
 0x241   : > { %v1732_v12 = vpop.f32.mrb[8].mxu0  ;;  %v1862_v14 = vsel %vm1798_vm8, %v2841_v43, %v1830_v50  ;;  %v1889_v16 = vpack.c.bf16 %v1861_v51, %v1859_v4 }
 0x242   : > { %v2843_v20 = vadd.f32 %v1732_v12, %v1394_v3  ;;  %v1734_v21 = vpop.f32.mrb[9].mxu0  ;;  %v1890_v22 = vpack.c.bf16 %v1862_v14, %v1860_v13 }
 0x243   : > { %v2845_v44 = vadd.f32 %v1734_v21, %v1396_v10  ;;  %v1736_v52 = vpop.f32.mrb[10].mxu0 }
 0x244   : > { %v1831_v45 = vmul.f32 0.01, %v2843_v20  ;;  %v2847_v24 = vadd.f32 %v1736_v52, %v1398_v19  ;;  %v1738_v46 = vpop.f32.mrb[11].mxu0  ;;  %2078 = vmatprep.mubr.bf16.mxu1 %v1890_v22  ;;  %vm1799_vm9 = vcmp.ge.f32.partialorder %v2843_v20, 0.0 }
 0x245   : > { %v1832_v54 = vmul.f32 0.01, %v2845_v44  ;;  %v2849_v25 = vadd.f32 %v1738_v46, %v1400_v23  ;;  %2079 = vmatmul.mubr.bf16.gmra.mrb[52].mxu1 %v1889_v16  ;;  %vm1800_vm10 = vcmp.ge.f32.partialorder %v2845_v44, 0.0 }
 0x246   : > { %vm1801_vm11 = vcmp.ge.f32.partialorder %v2847_v24, 0.0  ;;  %v1833_v28 = vmul.f32 0.01, %v2847_v24  ;;  %v1863_v30 = vsel %vm1799_vm9, %v2843_v20, %v1831_v45 }
 0x247   : > { %vm1802_vm12 = vcmp.ge.f32.partialorder %v2849_v25, 0.0  ;;  %v1834_v55 = vmul.f32 0.01, %v2849_v25  ;;  %v1864_v39 = vsel %vm1800_vm10, %v2845_v44, %v1832_v54 }
 0x248   : > { %v1865_v56 = vsel %vm1801_vm11, %v2847_v24, %v1833_v28 }
 0x249   : > { %v1742_v37 = vpop.f32.mrb[12].mxu0  ;;  %v1866_v41 = vsel %vm1802_vm12, %v2849_v25, %v1834_v55  ;;  %v1891_v11 = vpack.c.bf16 %v1865_v56, %v1863_v30 }
 0x24a   : > { %v2851_v17 = vadd.f32 %v1742_v37, %v1404_v47  ;;  %v1744_v18 = vpop.f32.mrb[13].mxu0  ;;  %v1892_v27 = vpack.c.bf16 %v1866_v41, %v1864_v39 }
 0x24b   : > { %v2853_v31 = vadd.f32 %v1744_v18, %v1406_v35  ;;  %v1746_v58 = vpop.f32.mrb[14].mxu0 }
 0x24c   : > { %v1835_v33 = vmul.f32 0.01, %v2851_v17  ;;  %v2855_v34 = vadd.f32 %v1746_v58, %v1408_v15  ;;  %v1748_v49 = vpop.f32.mrb[15].mxu0  ;;  %2086 = vmatprep.mubr.bf16.mxu1 %v1892_v27  ;;  %vm1803_vm13 = vcmp.ge.f32.partialorder %v2851_v17, 0.0 }
 0x24d   : > { %v1836_v60 = vmul.f32 0.01, %v2853_v31  ;;  %v2857_v43 = vadd.f32 %v1748_v49, %v1410_v48  ;;  %2087 = vmatmul.mubr.bf16.gmra.mrb[56].mxu1 %v1891_v11  ;;  %vm1804_vm14 = vcmp.ge.f32.partialorder %v2853_v31, 0.0 }
 0x24e   : > { %vm1805_vm15 = vcmp.ge.f32.partialorder %v2855_v34, 0.0  ;;  %v1837_v61 = vmul.f32 0.01, %v2855_v34  ;;  %v1867_v1 = vsel %vm1803_vm13, %v2851_v17, %v1835_v33 }
 0x24f   : > { %vm1806_vm0 = vcmp.ge.f32.partialorder %v2857_v43, 0.0  ;;  %v1838_v63 = vmul.f32 0.01, %v2857_v43  ;;  %v1868_v4 = vsel %vm1804_vm14, %v2853_v31, %v1836_v60 }
 0x250   : > { %v1869_v50 = vsel %vm1805_vm15, %v2855_v34, %v1837_v61 }
 0x251   : > { %v1752_v3 = vpop.f32.mrb[32].mxu0  ;;  %v1870_v0 = vsel %vm1806_vm0, %v2857_v43, %v1838_v63  ;;  %v1893_v2 = vpack.c.bf16 %v1869_v50, %v1867_v1 }
 0x252   : > { %v1753_v51 = vadd.f32 %v1752_v3, %v4044_v26  ;;  %v1754_v10 = vpop.f32.mrb[33].mxu0  ;;  %v1894_v12 = vpack.c.bf16 %v1870_v0, %v1868_v4 }
 0x253   : > { %v1755_v13 = vadd.f32 %v1754_v10, %v4046_v29  ;;  %v1756_v14 = vpop.f32.mrb[34].mxu0 }
 0x254   : > { %v1839_v16 = vmul.f32 0.01, %v1753_v51  ;;  %v1757_v19 = vadd.f32 %v1756_v14, %v4048_v32  ;;  %v1758_v20 = vpop.f32.mrb[35].mxu0  ;;  %2094 = vmatprep.mubr.bf16.mxu1 %v1894_v12  ;;  %vm1807_vm1 = vcmp.ge.f32.partialorder %v1753_v51, 0.0 }
 0x255   : > { %v1840_v21 = vmul.f32 0.01, %v1755_v13  ;;  %v1759_v22 = vadd.f32 %v1758_v20, %v4050_v36  ;;  %2095 = vmatmul.mubr.bf16.gmra.mrb[60].mxu1 %v1893_v2  ;;  %vm1808_vm2 = vcmp.ge.f32.partialorder %v1755_v13, 0.0 }
 0x256   : > { %vm1809_vm3 = vcmp.ge.f32.partialorder %v1757_v19, 0.0  ;;  %v1841_v23 = vmul.f32 0.01, %v1757_v19  ;;  %v1871_v44 = vsel %vm1807_vm1, %v1753_v51, %v1839_v16 }
 0x257   : > { %vm1810_vm4 = vcmp.ge.f32.partialorder %v1759_v22, 0.0  ;;  %v1842_v26 = vmul.f32 0.01, %v1759_v22  ;;  %v1872_v29 = vsel %vm1808_vm2, %v1755_v13, %v1840_v21 }
 0x258   : > { %v1873_v52 = vsel %vm1809_vm3, %v1757_v19, %v1841_v23  ;;  %v4124_v23 = vld [vmem:[#allocation11] ss:$0 sm:$0xff] }
 0x259   : > { %v1762_v45 = vpop.f32.mrb[36].mxu0  ;;  %v1874_v24 = vsel %vm1810_vm4, %v1759_v22, %v1842_v26  ;;  %v1895_v46 = vpack.c.bf16 %v1873_v52, %v1871_v44 }
 0x25a   : > { %v1763_v32 = vadd.f32 %v1762_v45, %v4052_v38  ;;  %v1764_v54 = vpop.f32.mrb[37].mxu0  ;;  %v1896_v25 = vpack.c.bf16 %v1874_v24, %v1872_v29 }
 0x25b   : > { %v1765_v28 = vadd.f32 %v1764_v54, %v4054_v40  ;;  %v1766_v55 = vpop.f32.mrb[38].mxu0 }
 0x25c   : > { %v1843_v36 = vmul.f32 0.01, %v1763_v32  ;;  %v1767_v47 = vadd.f32 %v1766_v55, %v4056_v42  ;;  %v1768_v30 = vpop.f32.mrb[39].mxu0  ;;  %2102 = vmatprep.mubr.bf16.mxu1 %v1896_v25  ;;  %vm1811_vm5 = vcmp.ge.f32.partialorder %v1763_v32, 0.0 }
 0x25d   : > { %v1844_v56 = vmul.f32 0.01, %v1765_v28  ;;  %v1769_v35 = vadd.f32 %v1768_v30, %v4058_v53  ;;  %2103 = vmatmul.mubr.bf16.gmra.mrb[64].mxu1 %v1895_v46  ;;  %vm1812_vm6 = vcmp.ge.f32.partialorder %v1765_v28, 0.0 }
 0x25e   : > { %vm1813_vm7 = vcmp.ge.f32.partialorder %v1767_v47, 0.0  ;;  %v1845_v37 = vmul.f32 0.01, %v1767_v47  ;;  %v1875_v39 = vsel %vm1811_vm5, %v1763_v32, %v1843_v36  ;;  %v4128_v32 = vld [vmem:[#allocation12] ss:$0 sm:$0xff] }
 0x25f   : > { %vm1814_vm8 = vcmp.ge.f32.partialorder %v1769_v35, 0.0  ;;  %v1846_v38 = vmul.f32 0.01, %v1769_v35  ;;  %v1876_v40 = vsel %vm1812_vm6, %v1765_v28, %v1844_v56 }
 0x260   : > { %v1877_v41 = vsel %vm1813_vm7, %v1767_v47, %v1845_v37 }
 0x261   : > { %v1772_v11 = vpop.f32.mrb[40].mxu0  ;;  %v1878_v15 = vsel %vm1814_vm8, %v1769_v35, %v1846_v38  ;;  %v1897_v17 = vpack.c.bf16 %v1877_v41, %v1875_v39 }
 0x262   : > { %v1773_v42 = vadd.f32 %v1772_v11, %v4060_v57  ;;  %v1774_v18 = vpop.f32.mrb[41].mxu0  ;;  %v1898_v27 = vpack.c.bf16 %v1878_v15, %v1876_v40 }
 0x263   : > { %v1775_v48 = vadd.f32 %v1774_v18, %v4062_v59  ;;  %v1776_v31 = vpop.f32.mrb[42].mxu0 }
 0x264   : > { %v1847_v53 = vmul.f32 0.01, %v1773_v42  ;;  %v1777_v58 = vadd.f32 %v1776_v31, %v4064_v62  ;;  %v1778_v33 = vpop.f32.mrb[43].mxu0  ;;  %2110 = vmatprep.mubr.bf16.mxu1 %v1898_v27  ;;  %vm1815_vm9 = vcmp.ge.f32.partialorder %v1773_v42, 0.0 }
 0x265   : > { %v1848_v34 = vmul.f32 0.01, %v1775_v48  ;;  %v1779_v49 = vadd.f32 %v1778_v33, %v4066_v5  ;;  %2111 = vmatmul.mubr.bf16.gmra.mrb[68].mxu1 %v1897_v17  ;;  %vm1816_vm10 = vcmp.ge.f32.partialorder %v1775_v48, 0.0 }
 0x266   : > { %vm1817_vm11 = vcmp.ge.f32.partialorder %v1777_v58, 0.0  ;;  %v1849_v60 = vmul.f32 0.01, %v1777_v58  ;;  %v1879_v43 = vsel %vm1815_vm9, %v1773_v42, %v1847_v53 }
 0x267   : > { %vm1818_vm12 = vcmp.ge.f32.partialorder %v1779_v49, 0.0  ;;  %v1850_v57 = vmul.f32 0.01, %v1779_v49  ;;  %v1880_v59 = vsel %vm1816_vm10, %v1775_v48, %v1848_v34 }
 0x268   : > { %v1881_v61 = vsel %vm1817_vm11, %v1777_v58, %v1849_v60 }
 0x269   : > { %v1782_v63 = vpop.f32.mrb[44].mxu0  ;;  %v1882_v1 = vsel %vm1818_vm12, %v1779_v49, %v1850_v57  ;;  %v1899_v50 = vpack.c.bf16 %v1881_v61, %v1879_v43 }
 0x26a   : > { %v1783_v62 = vadd.f32 %v1782_v63, %v4068_v6  ;;  %v1784_v3 = vpop.f32.mrb[45].mxu0  ;;  %v1900_v4 = vpack.c.bf16 %v1882_v1, %v1880_v59 }
 0x26b   : > { %v1785_v0 = vadd.f32 %v1784_v3, %v4070_v7  ;;  %v1786_v2 = vpop.f32.mrb[46].mxu0 }
 0x26c   : > { %v1851_v5 = vmul.f32 0.01, %v1783_v62  ;;  %v1787_v51 = vadd.f32 %v1786_v2, %v4072_v8  ;;  %v1788_v10 = vpop.f32.mrb[47].mxu0  ;;  %2118 = vmatprep.mubr.bf16.mxu1 %v1900_v4  ;;  %vm1819_vm13 = vcmp.ge.f32.partialorder %v1783_v62, 0.0 }
 0x26d   : > { %v1852_v12 = vmul.f32 0.01, %v1785_v0  ;;  %v1789_v13 = vadd.f32 %v1788_v10, %v4074_v9  ;;  %2119 = vmatmul.mubr.bf16.gmra.mrb[72].mxu1 %v1899_v50  ;;  %vm1820_vm14 = vcmp.ge.f32.partialorder %v1785_v0, 0.0 }
 0x26e   : > { %vm1821_vm15 = vcmp.ge.f32.partialorder %v1787_v51, 0.0  ;;  %v1853_v14 = vmul.f32 0.01, %v1787_v51  ;;  %v1883_v16 = vsel %vm1819_vm13, %v1783_v62, %v1851_v5 }
 0x26f   : > { %vm1822_vm0 = vcmp.ge.f32.partialorder %v1789_v13, 0.0  ;;  %v1854_v6 = vmul.f32 0.01, %v1789_v13  ;;  %v1884_v20 = vsel %vm1820_vm14, %v1785_v0, %v1852_v12 }
 0x270   : > { %v1885_v19 = vsel %vm1821_vm15, %v1787_v51, %v1853_v14 }
 0x271   : > { %v1886_v7 = vsel %vm1822_vm0, %v1789_v13, %v1854_v6  ;;  %v1901_v21 = vpack.c.bf16 %v1885_v19, %v1883_v16 }
 0x272   : > { %v1902_v22 = vpack.c.bf16 %v1886_v7, %v1884_v20 }
 0x274   : > { %2126 = vmatprep.mubr.bf16.mxu1 %v1902_v22 }
 0x275   : > { %2127 = vmatmul.mubr.bf16.gmra.mrb[76].mxu1 %v1901_v21 }
 0x310   : > { %v2746_v8 = vpop.f32.mrb[48].mxu1 }
 0x311   : > { %v2747_v26 = vpop.f32.mrb[49].mxu1 }
 0x312   : > { %v2748_v44 = vadd.f32 %v2747_v26, %v2746_v8  ;;  %v2749_v9 = vpop.f32.mrb[50].mxu1 }
 0x313   : > { %v2750_v52 = vpop.f32.mrb[51].mxu1 }
 0x314   : > { %v2073_v45 = vadd.f32 %v2748_v44, %v4124_v23  ;;  %v2751_v29 = vadd.f32 %v2750_v52, %v2749_v9 }
 0x316   : > { %v2076_v24 = vadd.f32 %v2751_v29, %v4124_v23  ;;  %vm2135_vm1 = vcmp.ge.f32.partialorder %v2073_v45, 0.0  ;;  %v2151_v46 = vmul.f32 0.01, %v2073_v45 }
 0x318   : > { %v2752_v54 = vpop.f32.mrb[52].mxu1  ;;  %v2167_v25 = vsel %vm2135_vm1, %v2073_v45, %v2151_v46  ;;  %vm2136_vm2 = vcmp.ge.f32.partialorder %v2076_v24, 0.0  ;;  %v2152_v28 = vmul.f32 0.01, %v2076_v24  ;;  %vm2357_vm1 = vcmask 7168  }
 0x319   : > { %v2753_v55 = vpop.f32.mrb[53].mxu1  ;;  %v2190_v36 = vmul.f32 %v4128_v32, %v2167_v25 }
 0x31a   : > { %v2754_v47 = vadd.f32 %v2753_v55, %v2752_v54  ;;  %v2755_v30 = vpop.f32.mrb[54].mxu1  ;;  %v2168_v56 = vsel %vm2136_vm2, %v2076_v24, %v2152_v28 }
 0x31b   : > { %v2756_v35 = vpop.f32.mrb[55].mxu1  ;;  %2206 = vadd.xlane.f32.xlu0 %v2190_v36  ;;  %v2191_v39 = vmul.f32 %v4128_v32, %v2168_v56 }
 0x31c   : > { %v2081_v37 = vadd.f32 %v2754_v47, %v4124_v23  ;;  %v2757_v38 = vadd.f32 %v2756_v35, %v2755_v30 }
 0x31e   : > { %v2084_v41 = vadd.f32 %v2757_v38, %v4124_v23  ;;  %vm2137_vm3 = vcmp.ge.f32.partialorder %v2081_v37, 0.0  ;;  %v2153_v11 = vmul.f32 0.01, %v2081_v37 }
 0x31f   : > { %2208 = vadd.xlane.f32.xlu0 %v2191_v39 }
 0x320   : > { %v2758_v40 = vpop.f32.mrb[56].mxu1  ;;  %v2169_v15 = vsel %vm2137_vm3, %v2081_v37, %v2153_v11  ;;  %vm2138_vm4 = vcmp.ge.f32.partialorder %v2084_v41, 0.0  ;;  %v2154_v17 = vmul.f32 0.01, %v2084_v41 }
 0x321   : > { %v2759_v42 = vpop.f32.mrb[57].mxu1  ;;  %v2192_v18 = vmul.f32 %v4128_v32, %v2169_v15 }
 0x322   : > { %v2760_v27 = vadd.f32 %v2759_v42, %v2758_v40  ;;  %v2761_v48 = vpop.f32.mrb[58].mxu1  ;;  %v2170_v31 = vsel %vm2138_vm4, %v2084_v41, %v2154_v17 }
 0x323   : > { %v2762_v53 = vpop.f32.mrb[59].mxu1  ;;  %2210 = vadd.xlane.f32.xlu1 %v2192_v18  ;;  %v2193_v34 = vmul.f32 %v4128_v32, %v2170_v31 }
 0x324   : > { %v2089_v58 = vadd.f32 %v2760_v27, %v4124_v23  ;;  %v2763_v33 = vadd.f32 %v2762_v53, %v2761_v48 }
 0x326   : > { %v2092_v49 = vadd.f32 %v2763_v33, %v4124_v23  ;;  %vm2139_vm5 = vcmp.ge.f32.partialorder %v2089_v58, 0.0  ;;  %v2155_v60 = vmul.f32 0.01, %v2089_v58 }
 0x327   : > { %2212 = vadd.xlane.f32.xlu1 %v2193_v34 }
 0x328   : > { %v2764_v57 = vpop.f32.mrb[60].mxu1  ;;  %v2171_v43 = vsel %vm2139_vm5, %v2089_v58, %v2155_v60  ;;  %vm2140_vm6 = vcmp.ge.f32.partialorder %v2092_v49, 0.0  ;;  %v2156_v61 = vmul.f32 0.01, %v2092_v49 }
 0x329   : > { %v2765_v63 = vpop.f32.mrb[61].mxu1  ;;  %v2194_v59 = vmul.f32 %v4128_v32, %v2171_v43 }
 0x32a   : > { %v2766_v1 = vadd.f32 %v2765_v63, %v2764_v57  ;;  %v2767_v50 = vpop.f32.mrb[62].mxu1  ;;  %v2172_v62 = vsel %vm2140_vm6, %v2092_v49, %v2156_v61 }
 0x32b   : > { %v2768_v3 = vpop.f32.mrb[63].mxu1  ;;  %2214 = vadd.xlane.f32.xlu0 %v2194_v59  ;;  %v2195_v4 = vmul.f32 %v4128_v32, %v2172_v62 }
 0x32c   : > { %v2097_v0 = vadd.f32 %v2766_v1, %v4124_v23  ;;  %v2769_v2 = vadd.f32 %v2768_v3, %v2767_v50 }
 0x32d   : > { %2216 = vadd.xlane.f32.xlu1 %v2195_v4 }
 0x32e   : > { %v2100_v5 = vadd.f32 %v2769_v2, %v4124_v23  ;;  %vm2141_vm7 = vcmp.ge.f32.partialorder %v2097_v0, 0.0  ;;  %v2157_v51 = vmul.f32 0.01, %v2097_v0 }
 0x330   : > { %v2770_v10 = vpop.f32.mrb[64].mxu1  ;;  %v2173_v12 = vsel %vm2141_vm7, %v2097_v0, %v2157_v51  ;;  %vm2142_vm8 = vcmp.ge.f32.partialorder %v2100_v5, 0.0  ;;  %v2158_v13 = vmul.f32 0.01, %v2100_v5  ;;  %v4160_v51 = vld [vmem:[#allocation2] ss:$0 sm:$0xff] }
 0x331   : > { %v2771_v14 = vpop.f32.mrb[65].mxu1  ;;  %v2196_v6 = vmul.f32 %v4128_v32, %v2173_v12 }
 0x332   : > { %v2772_v16 = vadd.f32 %v2771_v14, %v2770_v10  ;;  %v2773_v19 = vpop.f32.mrb[66].mxu1  ;;  %v2174_v20 = vsel %vm2142_vm8, %v2100_v5, %v2158_v13 }
 0x333   : > { %v2774_v7 = vpop.f32.mrb[67].mxu1  ;;  %2218 = vadd.xlane.f32.xlu0 %v2196_v6  ;;  %v2197_v21 = vmul.f32 %v4128_v32, %v2174_v20 }
 0x334   : > { %v2105_v22 = vadd.f32 %v2772_v16, %v4124_v23  ;;  %v2775_v8 = vadd.f32 %v2774_v7, %v2773_v19 }
 0x335   : > { %2220 = vadd.xlane.f32.xlu1 %v2197_v21 }
 0x336   : > { %v2108_v26 = vadd.f32 %v2775_v8, %v4124_v23  ;;  %vm2143_vm9 = vcmp.ge.f32.partialorder %v2105_v22, 0.0  ;;  %v2159_v44 = vmul.f32 0.01, %v2105_v22 }
 0x338   : > { %v2776_v9 = vpop.f32.mrb[68].mxu1  ;;  %v2175_v52 = vsel %vm2143_vm9, %v2105_v22, %v2159_v44  ;;  %vm2144_vm10 = vcmp.ge.f32.partialorder %v2108_v26, 0.0  ;;  %v2160_v45 = vmul.f32 0.01, %v2108_v26 }
 0x339   : > { %v2777_v29 = vpop.f32.mrb[69].mxu1  ;;  %v2198_v24 = vmul.f32 %v4128_v32, %v2175_v52 }
 0x33a   : > { %v2778_v46 = vadd.f32 %v2777_v29, %v2776_v9  ;;  %v2779_v54 = vpop.f32.mrb[70].mxu1  ;;  %v2176_v25 = vsel %vm2144_vm10, %v2108_v26, %v2160_v45 }
 0x33b   : > { %v2780_v28 = vpop.f32.mrb[71].mxu1  ;;  %2222 = vadd.xlane.f32.xlu0 %v2198_v24  ;;  %v2199_v55 = vmul.f32 %v4128_v32, %v2176_v25 }
 0x33c   : > { %v2113_v36 = vadd.f32 %v2778_v46, %v4124_v23  ;;  %v2781_v47 = vadd.f32 %v2780_v28, %v2779_v54 }
 0x33d   : > { %2224 = vadd.xlane.f32.xlu1 %v2199_v55 }
 0x33e   : > { %v2116_v30 = vadd.f32 %v2781_v47, %v4124_v23  ;;  %vm2145_vm11 = vcmp.ge.f32.partialorder %v2113_v36, 0.0  ;;  %v2161_v56 = vmul.f32 0.01, %v2113_v36 }
 0x340   : > { %v2782_v35 = vpop.f32.mrb[72].mxu1  ;;  %v2177_v37 = vsel %vm2145_vm11, %v2113_v36, %v2161_v56  ;;  %vm2146_vm12 = vcmp.ge.f32.partialorder %v2116_v30, 0.0  ;;  %v2162_v38 = vmul.f32 0.01, %v2116_v30 }
 0x341   : > { %v2783_v39 = vpop.f32.mrb[73].mxu1  ;;  %v2200_v41 = vmul.f32 %v4128_v32, %v2177_v37 }
 0x342   : > { %v2784_v11 = vadd.f32 %v2783_v39, %v2782_v35  ;;  %v2785_v40 = vpop.f32.mrb[74].mxu1  ;;  %v2178_v15 = vsel %vm2146_vm12, %v2116_v30, %v2162_v38 }
 0x343   : > { %v2786_v17 = vpop.f32.mrb[75].mxu1  ;;  %2226 = vadd.xlane.f32.xlu0 %v2200_v41  ;;  %v2201_v42 = vmul.f32 %v4128_v32, %v2178_v15 }
 0x344   : > { %v2121_v18 = vadd.f32 %v2784_v11, %v4124_v23  ;;  %v2787_v27 = vadd.f32 %v2786_v17, %v2785_v40 }
 0x345   : > { %2228 = vadd.xlane.f32.xlu1 %v2201_v42 }
 0x346   : > { %v2124_v48 = vadd.f32 %v2787_v27, %v4124_v23  ;;  %vm2147_vm13 = vcmp.ge.f32.partialorder %v2121_v18, 0.0  ;;  %v2163_v31 = vmul.f32 0.01, %v2121_v18 }
 0x348   : > { %v2788_v53 = vpop.f32.mrb[76].mxu1  ;;  %v2179_v58 = vsel %vm2147_vm13, %v2121_v18, %v2163_v31  ;;  %vm2148_vm14 = vcmp.ge.f32.partialorder %v2124_v48, 0.0  ;;  %v2164_v33 = vmul.f32 0.01, %v2124_v48 }
 0x349   : > { %v2789_v34 = vpop.f32.mrb[77].mxu1  ;;  %v2202_v49 = vmul.f32 %v4128_v32, %v2179_v58 }
 0x34a   : > { %v2790_v60 = vadd.f32 %v2789_v34, %v2788_v53  ;;  %v2791_v57 = vpop.f32.mrb[78].mxu1  ;;  %v2180_v43 = vsel %vm2148_vm14, %v2124_v48, %v2164_v33 }
 0x34b   : > { %v2792_v61 = vpop.f32.mrb[79].mxu1  ;;  %2230 = vadd.xlane.f32.xlu0 %v2202_v49  ;;  %v2203_v63 = vmul.f32 %v4128_v32, %v2180_v43 }
 0x34c   : > { %v2129_v59 = vadd.f32 %v2790_v60, %v4124_v23  ;;  %v2793_v1 = vadd.f32 %v2792_v61, %v2791_v57 }
 0x34d   : > { %2232 = vadd.xlane.f32.xlu1 %v2203_v63 }
 0x34e   : > { %v2132_v50 = vadd.f32 %v2793_v1, %v4124_v23  ;;  %vm2149_vm15 = vcmp.ge.f32.partialorder %v2129_v59, 0.0  ;;  %v2165_v62 = vmul.f32 0.01, %v2129_v59 }
 0x350   : > { %v2181_v3 = vsel %vm2149_vm15, %v2129_v59, %v2165_v62  ;;  %vm2150_vm0 = vcmp.ge.f32.partialorder %v2132_v50, 0.0  ;;  %v2166_v4 = vmul.f32 0.01, %v2132_v50 }
 0x351   : > { %v2204_v0 = vmul.f32 %v4128_v32, %v2181_v3 }
 0x352   : > { %v2182_v2 = vsel %vm2150_vm0, %v2132_v50, %v2166_v4 }
 0x353   : > { %2234 = vadd.xlane.f32.xlu0 %v2204_v0  ;;  %v2205_v5 = vmul.f32 %v4128_v32, %v2182_v2 }
 0x355   : > { %2236 = vadd.xlane.f32.xlu1 %v2205_v5 }
 0x3a8   : > { %v2207_v10 = vpop.xlane.xlu0 %2206 }
 0x3a9   : > { %v2245_v12 = vadd.f32 %v4160_v51, %v2207_v10 }
 0x3ab   : > { %v2708_v13 = vmul.f32 -1.442695, %v2245_v12 }
 0x3ac   : > { %v2209_v14 = vpop.xlane.xlu0 %2208 }
 0x3ad   : > { %3306 = vpow2.f32 %v2708_v13  ;;  %v2246_v23 = vadd.f32 %v4160_v51, %v2209_v14 }
 0x3af   : > { %v2709_v6 = vmul.f32 -1.442695, %v2246_v23 }
 0x3b0   : > { %v2211_v16 = vpop.xlane.xlu1 %2210 }
 0x3b1   : > { %3308 = vpow2.f32 %v2709_v6  ;;  %v2247_v19 = vadd.f32 %v4160_v51, %v2211_v16 }
 0x3b3   : > { %v2710_v20 = vmul.f32 -1.442695, %v2247_v19 }
 0x3b4   : > { %v2213_v7 = vpop.xlane.xlu1 %2212 }
 0x3b5   : > { %3310 = vpow2.f32 %v2710_v20  ;;  %v2248_v32 = vadd.f32 %v4160_v51, %v2213_v7 }
 0x3b7   : > { %v3307_v21 = vpop.eup %3306  ;;  %v2711_v22 = vmul.f32 -1.442695, %v2248_v32 }
 0x3b8   : > { %v2309_v8 = vadd.f32 1.0, %v3307_v21  ;;  %v2215_v26 = vpop.xlane.xlu0 %2214 }
 0x3b9   : > { %3312 = vpow2.f32 %v2711_v22  ;;  %v2249_v44 = vadd.f32 %v4160_v51, %v2215_v26 }
 0x3ba   : > { %3314 = vrcp.f32 %v2309_v8  ;;  %v2217_v9 = vpop.xlane.xlu1 %2216 }
 0x3bb   : > { %v3309_v52 = vpop.eup %3308  ;;  %v2712_v45 = vmul.f32 -1.442695, %v2249_v44  ;;  %v2250_v29 = vadd.f32 %v4160_v51, %v2217_v9 }
 0x3bc   : > { %v2310_v24 = vadd.f32 1.0, %v3309_v52 }
 0x3bd   : > { %3316 = vpow2.f32 %v2712_v45  ;;  %v2713_v46 = vmul.f32 -1.442695, %v2250_v29 }
 0x3be   : > { %3318 = vrcp.f32 %v2310_v24 }
 0x3bf   : > { %v3311_v54 = vpop.eup %3310  ;;  %3320 = vpow2.f32 %v2713_v46 }
 0x3c0   : > { %v2311_v25 = vadd.f32 1.0, %v3311_v54  ;;  %v2219_v28 = vpop.xlane.xlu0 %2218 }
 0x3c1   : > { %v2251_v55 = vadd.f32 %v4160_v51, %v2219_v28 }
 0x3c2   : > { %3322 = vrcp.f32 %v2311_v25  ;;  %v2221_v36 = vpop.xlane.xlu1 %2220 }
 0x3c3   : > { %v3313_v47 = vpop.eup %3312  ;;  %v2714_v30 = vmul.f32 -1.442695, %v2251_v55  ;;  %v2252_v56 = vadd.f32 %v4160_v51, %v2221_v36 }
 0x3c4   : > { %v3315_v35 = vpop.eup %3314  ;;  %v2312_v37 = vadd.f32 1.0, %v3313_v47 }
 0x3c5   : > { %2358 = vst.msk [vmem:[%s4171_s11] sm:$0xff] %vm2357_vm1, %v3315_v35  ;;  %3324 = vpow2.f32 %v2714_v30  ;;  %v2715_v38 = vmul.f32 -1.442695, %v2252_v56 }
 0x3c6   : > { %3326 = vrcp.f32 %v2312_v37 }
 0x3c7   : > { %v3317_v39 = vpop.eup %3316  ;;  %3328 = vpow2.f32 %v2715_v38 }
 0x3c8   : > { %v3319_v41 = vpop.eup %3318  ;;  %v2313_v11 = vadd.f32 1.0, %v3317_v39  ;;  %v2223_v40 = vpop.xlane.xlu0 %2222 }
 0x3c9   : > { %v3321_v15 = vpop.eup %3320  ;;  %2359 = vst.msk [vmem:[%s4171_s11 + $0x8] sm:$0xff] %vm2357_vm1, %v3319_v41  ;;  %v2253_v17 = vadd.f32 %v4160_v51, %v2223_v40 }
 0x3ca   : > { %3330 = vrcp.f32 %v2313_v11  ;;  %v2314_v42 = vadd.f32 1.0, %v3321_v15  ;;  %v2225_v18 = vpop.xlane.xlu1 %2224 }
 0x3cb   : > { %v2716_v27 = vmul.f32 -1.442695, %v2253_v17  ;;  %v2254_v48 = vadd.f32 %v4160_v51, %v2225_v18 }
 0x3cc   : > { %v3323_v31 = vpop.eup %3322  ;;  %3332 = vrcp.f32 %v2314_v42 }
 0x3cd   : > { %2360 = vst.msk [vmem:[%s4171_s11 + $0x10] sm:$0xff] %vm2357_vm1, %v3323_v31  ;;  %3334 = vpow2.f32 %v2716_v27  ;;  %v2717_v53 = vmul.f32 -1.442695, %v2254_v48 }
 0x3cf   : > { %v3325_v58 = vpop.eup %3324  ;;  %3336 = vpow2.f32 %v2717_v53 }
 0x3d0   : > { %v3327_v33 = vpop.eup %3326  ;;  %v2315_v34 = vadd.f32 1.0, %v3325_v58  ;;  %v2227_v49 = vpop.xlane.xlu0 %2226 }
 0x3d1   : > { %v3329_v60 = vpop.eup %3328  ;;  %2361 = vst.msk [vmem:[%s4171_s11 + $0x18] sm:$0xff] %vm2357_vm1, %v3327_v33  ;;  %v2255_v57 = vadd.f32 %v4160_v51, %v2227_v49 }
 0x3d2   : > { %3338 = vrcp.f32 %v2315_v34  ;;  %v2316_v43 = vadd.f32 1.0, %v3329_v60  ;;  %v2229_v61 = vpop.xlane.xlu1 %2228 }
 0x3d3   : > { %v2718_v63 = vmul.f32 -1.442695, %v2255_v57  ;;  %v2256_v59 = vadd.f32 %v4160_v51, %v2229_v61 }
 0x3d4   : > { %v3331_v1 = vpop.eup %3330  ;;  %3340 = vrcp.f32 %v2316_v43 }
 0x3d5   : > { %2362 = vst.msk [vmem:[%s4171_s11 + $0x20] sm:$0xff] %vm2357_vm1, %v3331_v1  ;;  %3342 = vpow2.f32 %v2718_v63  ;;  %v2719_v50 = vmul.f32 -1.442695, %v2256_v59 }
 0x3d6   : > { %v3333_v62 = vpop.eup %3332 }
 0x3d7   : > { %v3335_v3 = vpop.eup %3334  ;;  %2363 = vst.msk [vmem:[%s4171_s11 + $0x28] sm:$0xff] %vm2357_vm1, %v3333_v62  ;;  %3344 = vpow2.f32 %v2719_v50 }
 0x3d8   : > { %v2317_v4 = vadd.f32 1.0, %v3335_v3  ;;  %v2231_v0 = vpop.xlane.xlu0 %2230 }
 0x3d9   : > { %v3337_v2 = vpop.eup %3336  ;;  %v2257_v5 = vadd.f32 %v4160_v51, %v2231_v0 }
 0x3da   : > { %3346 = vrcp.f32 %v2317_v4  ;;  %v2318_v10 = vadd.f32 1.0, %v3337_v2  ;;  %v2233_v12 = vpop.xlane.xlu1 %2232 }
 0x3db   : > { %v2720_v13 = vmul.f32 -1.442695, %v2257_v5  ;;  %v2258_v14 = vadd.f32 %v4160_v51, %v2233_v12 }
 0x3dc   : > { %v3339_v23 = vpop.eup %3338  ;;  %3348 = vrcp.f32 %v2318_v10 }
 0x3dd   : > { %2364 = vst.msk [vmem:[%s4171_s11 + $0x30] sm:$0xff] %vm2357_vm1, %v3339_v23  ;;  %3350 = vpow2.f32 %v2720_v13  ;;  %v2721_v6 = vmul.f32 -1.442695, %v2258_v14 }
 0x3de   : > { %v3341_v16 = vpop.eup %3340 }
 0x3df   : > { %v3343_v19 = vpop.eup %3342  ;;  %2365 = vst.msk [vmem:[%s4171_s11 + $0x38] sm:$0xff] %vm2357_vm1, %v3341_v16  ;;  %3352 = vpow2.f32 %v2721_v6 }
 0x3e0   : > { %v2319_v20 = vadd.f32 1.0, %v3343_v19  ;;  %v2235_v7 = vpop.xlane.xlu0 %2234 }
 0x3e1   : > { %v3345_v32 = vpop.eup %3344  ;;  %v2259_v21 = vadd.f32 %v4160_v51, %v2235_v7 }
 0x3e2   : > { %3354 = vrcp.f32 %v2319_v20  ;;  %v2320_v22 = vadd.f32 1.0, %v3345_v32  ;;  %v2237_v8 = vpop.xlane.xlu1 %2236 }
 0x3e3   : > { %v2722_v26 = vmul.f32 -1.442695, %v2259_v21  ;;  %v2260_v44 = vadd.f32 %v4160_v51, %v2237_v8 }
 0x3e4   : > { %v3347_v9 = vpop.eup %3346  ;;  %3356 = vrcp.f32 %v2320_v22 }
 0x3e5   : > { %2366 = vst.msk [vmem:[%s4171_s11 + $0x40] sm:$0xff] %vm2357_vm1, %v3347_v9  ;;  %3358 = vpow2.f32 %v2722_v26  ;;  %v2723_v52 = vmul.f32 -1.442695, %v2260_v44 }
 0x3e6   : > { %v3349_v45 = vpop.eup %3348 }
 0x3e7   : > { %v3351_v29 = vpop.eup %3350  ;;  %2367 = vst.msk [vmem:[%s4171_s11 + $0x48] sm:$0xff] %vm2357_vm1, %v3349_v45  ;;  %3360 = vpow2.f32 %v2723_v52 }
 0x3e8   : > { %v2321_v24 = vadd.f32 1.0, %v3351_v29 }
 0x3e9   : > { %v3353_v46 = vpop.eup %3352 }
 0x3ea   : > { %3362 = vrcp.f32 %v2321_v24  ;;  %v2322_v54 = vadd.f32 1.0, %v3353_v46 }
 0x3ec   : > { %v3355_v51 = vpop.eup %3354  ;;  %3364 = vrcp.f32 %v2322_v54 }
 0x3ed   : > { %2368 = vst.msk [vmem:[%s4171_s11 + $0x50] sm:$0xff] %vm2357_vm1, %v3355_v51 }
 0x3ee   : > { %v3357_v25 = vpop.eup %3356 }
 0x3ef   : > { %v3359_v28 = vpop.eup %3358  ;;  %2369 = vst.msk [vmem:[%s4171_s11 + $0x58] sm:$0xff] %vm2357_vm1, %v3357_v25 }
 0x3f0   : > { %v2323_v55 = vadd.f32 1.0, %v3359_v28 }
 0x3f1   : > { %v3361_v36 = vpop.eup %3360 }
 0x3f2   : > { %3366 = vrcp.f32 %v2323_v55  ;;  %v2324_v47 = vadd.f32 1.0, %v3361_v36 }
 0x3f4   : > { %v3363_v30 = vpop.eup %3362  ;;  %3368 = vrcp.f32 %v2324_v47 }
 0x3f5   : > { %2370 = vst.msk [vmem:[%s4171_s11 + $0x60] sm:$0xff] %vm2357_vm1, %v3363_v30 }
 0x3f6   : > { %v3365_v56 = vpop.eup %3364 }
 0x3f7   : > { %2371 = vst.msk [vmem:[%s4171_s11 + $0x68] sm:$0xff] %vm2357_vm1, %v3365_v56 }
 0x3fc   : > { %v3367_v35 = vpop.eup %3366 }
 0x3fd   : > { %2372 = vst.msk [vmem:[%s4171_s11 + $0x70] sm:$0xff] %vm2357_vm1, %v3367_v35 }
 0x3fe   : > { %v3369_v37 = vpop.eup %3368 }
 0x3ff   : > { %2373 = vst.msk [vmem:[%s4171_s11 + $0x78] sm:$0xff] %vm2357_vm1, %v3369_v37 }
 0x400   : > { %3553 = shalt.err (!%p3550_p8)
}
 0x401   : > { %s3554_s10 = scalar_lea.hbm %s4214_s23, 2048  ;;  %s3558_s9 = scalar_lea.hbm %s4271_s7, 4096 }
 0x402   : > { %p3555_p6 = scmp.ne.s32.totalorder %s4214_s23, %s3554_s10  ;;  %p3559_p3 = scmp.lt.u32.totalorder %s4214_s23, %s4271_s7 }
 0x403   : > { %p3560_p0 = scmp.lt.u32.totalorder %s3558_s9, %s3554_s10  ;;  %p3562_p2 = scmp.lt.u32.totalorder %s3554_s10, %s4214_s23 }
 0x404   : > { %p3556_p9 = pnand %p3555_p6, %p4290_p7 }
 0x405   : > { %p3561_p5 = por %p3560_p0, %p3559_p3 }
 0x406   : > { %p3557_p4 = pneg %p3556_p9 }
 0x407   : > { %p3563_p10 = por %p3562_p2, %p3561_p5 }
 0x409   : > { %p3564_p1 = pnand %p3563_p10, %p3557_p4 }
 0x40b   : > { %3567 = shalt.err (!%p3564_p1)
}
 0x40c   : > { %s3634_s16 = smov 128   ;;  %s3635_s17 = smov 8  }
 0x40d   : > { %2979 = dma.vmem_to_hbm [thread:$0]  (%p4290_p7), %s4216_s15, 2048, %s4214_s23, %s2375_s22, %s3634_s16, %s3634_s16, %s3635_s17  }
 0x40e PF: > { %s2403_s14 = sand.u32 1, %s3606_s26   ;;  %p4291_p11 = scmp.ne.s32.totalorder %s4281_s30, 0 }
 0x40f   : > { %p4292_p12 = scmp.ge.s32.totalorder %s3618_s29, 2  ;;  %s2404_s8 = scalar_lea.sflag [#allocation5], %s2403_s14 }
 0x411   : > { %p3002_p13 = pnand %p4292_p12, %p4291_p11 }
 0x413   : > { %3601 = dma.done.wait (!%p3002_p13), %s2404_s8, 2048  }
 0x414   : > { %3603 = vsyncadd (!%p3002_p13), %s2404_s8, 4294965248  ;;  %p25_p8 = scmp.ge.s32.totalorder %s3833_s12, 4   ;;  %s4293_s26 = smov %s3610_s27 }
 0x415   : > { %s4294_s27 = smov %s3614_s28  ;;  %s4295_s28 = smov %s3845_s19 }
 0x416   : > { %s4296_s29 = smov %s3833_s12  ;;  %27 = sbr.rel (!%p25_p8) target bundleno = 11 (0xb), region = 113 }
 0x41d   :  { %2409 = vsyncpa [#allocation4], 1 }
 0x41e   :  { %2411 = vsyncpa [#allocation4 + $0x1], 1 }
 0x41f   :  { %2412 = vsyncpa [#allocation7], 1 }
 0x420   :  { %2413 = vsyncpa [#allocation10], 1 }
 0x421   :  { %2414 = vsyncpa [#allocation13], 1 }
 0x422   :  { %2415 = vsyncpa [#allocation5], 1 }
 0x423   :  { %2417 = vsyncpa [#allocation5 + $0x1], 1 }

</bundles_post_ra>
